<compile_context>
chip_gen: v7x
topology: tpu7x:2x2x1
jax: 0.10.0
libtpu: 0.0.40
codegen_flags: <defaults>
</compile_context>

<pallas_src>
import jax
import jax.numpy as jnp
from jax.experimental import pallas as pl
from jax.experimental.pallas import tpu as pltpu


def _link_predictor_kernel(zs_ref, zd_ref, ws_ref, wd_ref, b_ref, wf_ref, bf_ref, o_ref):
    # Two K=C MXU dots (f32 accumulation) -- no lane-dim concat / VMEM copy.
    h = jnp.dot(zs_ref[...], ws_ref[...], preferred_element_type=jnp.float32)
    h = h + jnp.dot(zd_ref[...], wd_ref[...], preferred_element_type=jnp.float32)
    # Pre-summed bias + ReLU on the VPU.
    h = jnp.maximum(h + b_ref[...], 0.0)
    # Final projection to one logit per row: VPU multiply + cross-lane reduce (XLU);
    # scalar bias read from SMEM.
    logits = jnp.sum(h * wf_ref[...], axis=-1, keepdims=True) + bf_ref[0, 0]
    o_ref[...] = logits.astype(o_ref.dtype)


def _round_up(x, m):
    return (x + m - 1) // m * m


def _tpu_vmem_and_cores():
    """Per-TensorCore VMEM capacity and a 'two TensorCores per chip' flag (v7x)."""
    try:
        info = pltpu.get_tpu_info()
        vmem = int(getattr(info, "vmem_capacity_bytes", 64 * 2**20))
    except Exception:
        vmem = 64 * 2**20  # conservative (v7x-sized) fallback
    # v7x exposes 64 MiB per-TC VMEM and 2 TCs/chip; v5e/v6e have 128 MiB and 1 TC.
    two_cores = vmem <= 96 * 2**20
    return vmem, two_cores


def _choose_tile_n(n, c_pad, itemsize, *, vmem_cap, two_cores, weight_bytes, max_tile=2048):
    """Row-tile: as large as the VMEM budget allows, 128-aligned, v7x-aware."""
    # Budget for the double-buffered streamed z_src/z_dst tiles, leaving room for the
    # resident weights + bias rows + output column.
    budget = max(int(0.45 * vmem_cap) - weight_bytes, 8 * 2**20)
    per_row = 2 * 2 * c_pad * itemsize  # 2 inputs x 2 pipeline buffers
    tile = min(max_tile, max(8, budget // per_row), _round_up(n, 8))
    tile = (tile // 128) * 128 if tile >= 128 else _round_up(tile, 8)
    if two_cores:
        # Only on v7x: make sure both TensorCores get work under ("parallel",) semantics,
        # preferring an even number of grid steps.
        n8 = _round_up(n, 8)
        steps = -(-n8 // tile)
        if steps == 1 and tile >= 256:
            tile //= 2
        elif steps > 1 and steps % 2 == 1 and tile > 128:
            shrunk = _round_up(-(-n8 // (steps + 1)), 128)
            if 128 <= shrunk < tile:
                tile = shrunk
    return tile


def _vmem_limit(tile_n, c_pad, stream_size, w_bufs, vmem_cap):
    need = (2 * 2 * tile_n * c_pad * stream_size    # z_src + z_dst tiles, double-buffered
            + w_bufs * 2 * c_pad * c_pad * stream_size  # resident W_src + W_dst
            + w_bufs * 2 * c_pad * 4                # bias row + w_final row (f32)
            + 2 * tile_n * 128 * 4)                 # (tile_n, 1) output pads to 128 lanes
    limit = min(max(need + (8 << 20), 32 << 20), int(0.7 * vmem_cap))
    return int(min(max(limit, need + (2 << 20)), vmem_cap))


def link_predictor(z_src, z_dst, params, *, tile_n=None, stream_dtype=None):
    """params: dict with w_src/b_src/w_dst/b_dst/w_final/b_final (weights stored [in, out])."""
    N, C = z_src.shape
    assert z_dst.shape == (N, C)
    out_dtype = z_src.dtype
    sdtype = jnp.dtype(stream_dtype) if stream_dtype is not None else jnp.dtype(out_dtype)
    s_size = sdtype.itemsize

    # Lane-align the feature dim once in the wrapper (zero padding is exact: padded h
    # columns are ReLU(0)=0 and padded w_final entries are 0, so they contribute nothing).
    Cp = max(128, _round_up(C, 128))

    vmem_cap, two_cores = _tpu_vmem_and_cores()
    # Conservative (double-buffered) weight footprint for the tile budget.
    weight_bytes = 2 * (2 * Cp * Cp * s_size)
    if tile_n is None:
        tile_n = _choose_tile_n(N, Cp, s_size, vmem_cap=vmem_cap,
                                two_cores=two_cores, weight_bytes=weight_bytes)
    tile_n = _round_up(tile_n, 8)

    # Pad N to the tile (no divisibility requirement); slice the result back at the end.
    n_pad = _round_up(N, tile_n)

    def pad2(a, rows, cols):
        pr, pc = rows - a.shape[0], cols - a.shape[1]
        return jnp.pad(a, ((0, pr), (0, pc))) if (pr or pc) else a

    zs = pad2(z_src.astype(sdtype), n_pad, Cp)
    zd = pad2(z_dst.astype(sdtype), n_pad, Cp)
    w_s = pad2(params["w_src"], Cp, Cp).astype(sdtype)
    w_d = pad2(params["w_dst"], Cp, Cp).astype(sdtype)
    b_cat = pad2((params["b_src"] + params["b_dst"]).reshape(1, C).astype(jnp.float32), 1, Cp)
    w_fin = pad2(params["w_final"].reshape(1, C).astype(jnp.float32), 1, Cp)
    b_fin = params["b_final"].reshape(1, 1).astype(jnp.float32)  # scalar -> SMEM

    grid = (n_pad // tile_n,)

    def build_call(single_buffer_consts):
        const_mode = {}
        if single_buffer_consts:
            # Constant-index operands: no point double-buffering them.
            const_mode = dict(pipeline_mode=pl.Buffered(1))
        w_bufs = 1 if single_buffer_consts else 2
        return pl.pallas_call(
            _link_predictor_kernel,
            out_shape=jax.ShapeDtypeStruct((n_pad, 1), out_dtype),
            grid_spec=pltpu.PrefetchScalarGridSpec(
                num_scalar_prefetch=0,
                grid=grid,
                in_specs=[
                    pl.BlockSpec((tile_n, Cp), lambda i: (i, 0)),           # z_src row tile
                    pl.BlockSpec((tile_n, Cp), lambda i: (i, 0)),           # z_dst row tile
                    pl.BlockSpec((Cp, Cp), lambda i: (0, 0), **const_mode),  # W_src (resident)
                    pl.BlockSpec((Cp, Cp), lambda i: (0, 0), **const_mode),  # W_dst (resident)
                    pl.BlockSpec((1, Cp), lambda i: (0, 0), **const_mode),   # b_src + b_dst
                    pl.BlockSpec((1, Cp), lambda i: (0, 0), **const_mode),   # w_final row
                    pl.BlockSpec(memory_space=pltpu.MemorySpace.SMEM),       # b_final scalar
                ],
                out_specs=pl.BlockSpec((tile_n, 1), lambda i: (i, 0)),
            ),
            compiler_params=pltpu.CompilerParams(
                dimension_semantics=("parallel",),
                vmem_limit_bytes=_vmem_limit(tile_n, Cp, s_size, w_bufs, vmem_cap),
            ),
        )

    args = (zs, zd, w_s, w_d, b_cat, w_fin, b_fin)
    try:
        out = build_call(True)(*args)
    except Exception:
        # Fallback if this JAX build rejects pipeline_mode=pl.Buffered(1) on BlockSpec.
        out = build_call(False)(*args)

    return out[:N] if n_pad != N else out


def init_params(key, in_channels, dtype=jnp.float32):
    """Deterministic synthetic parameters (shapes match torch.nn.Linear layers).
    torch Linear stores weight as (out, in); we store the transpose (in, out)."""
    ks = jax.random.split(key, 6)
    scale = 1.0 / jnp.sqrt(in_channels)
    u = lambda k, shape: jax.random.uniform(k, shape, dtype, minval=-1, maxval=1) * scale
    return {
        "w_src": u(ks[0], (in_channels, in_channels)),
        "b_src": u(ks[1], (1, in_channels)),
        "w_dst": u(ks[2], (in_channels, in_channels)),
        "b_dst": u(ks[3], (1, in_channels)),
        "w_final": u(ks[4], (in_channels, 1)),
        "b_final": u(ks[5], (1, 1)),
    }


def link_predictor_ref(z_src, z_dst, p):
    hp = jax.lax.Precision.HIGHEST
    h = (jnp.dot(z_src, p["w_src"], precision=hp) + p["b_src"]
         + jnp.dot(z_dst, p["w_dst"], precision=hp) + p["b_dst"])
    h = jnp.maximum(h, 0.0)
    return jnp.dot(h, p["w_final"], precision=hp) + p["b_final"]


if __name__ == "__main__":
    key = jax.random.PRNGKey(0)
    k_param, k_src, k_dst = jax.random.split(key, 3)

    # Small but lane-aligned shapes: 256 node pairs, 128-dim embeddings.
    N, C = 256, 128
    params = init_params(k_param, C)
    z_src = jax.random.normal(k_src, (N, C), jnp.float32)
    z_dst = jax.random.normal(k_dst, (N, C), jnp.float32)

    out = jax.block_until_ready(link_predictor(z_src, z_dst, params))
    ref = link_predictor_ref(z_src, z_dst, params)
    assert out.shape == (N, 1)
    assert jnp.allclose(out, ref, atol=1e-2, rtol=1e-2), float(jnp.max(jnp.abs(out - ref)))

    # Row-padding path (N not a multiple of the tile) AND lane-padding path (C < 128).
    N2, C2 = 10, 32
    params2 = init_params(jax.random.PRNGKey(7), C2)
    z_s2 = jax.random.normal(jax.random.PRNGKey(1), (N2, C2), jnp.float32)
    z_d2 = jax.random.normal(jax.random.PRNGKey(2), (N2, C2), jnp.float32)
    out2 = jax.block_until_ready(link_predictor(z_s2, z_d2, params2))
    ref2 = link_predictor_ref(z_s2, z_d2, params2)
    assert out2.shape == (N2, 1)
    assert jnp.allclose(out2, ref2, atol=1e-2, rtol=1e-2), float(jnp.max(jnp.abs(out2 - ref2)))

    # bf16 streaming fast path (HBM-bound kernel => halves streamed bytes), f32 accumulation.
    out3 = jax.block_until_ready(
        link_predictor(z_src, z_dst, params, stream_dtype=jnp.bfloat16))
    assert out3.shape == (N, 1)
    assert jnp.allclose(out3, ref, atol=5e-2, rtol=5e-2), float(jnp.max(jnp.abs(out3 - ref)))

    print("KERNEL_OK")
</pallas_src>

<mosaic_0001>
module attributes {stable_mosaic.version = 11 : i64} {
  func.func @_link_predictor_kernel(%arg0: i32, %arg1: memref<128x128xf32, #tpu.memory_space<vmem>>, %arg2: memref<128x128xf32, #tpu.memory_space<vmem>>, %arg3: memref<128x128xf32, #tpu.memory_space<vmem>>, %arg4: memref<128x128xf32, #tpu.memory_space<vmem>>, %arg5: memref<1x128xf32, #tpu.memory_space<vmem>>, %arg6: memref<1x128xf32, #tpu.memory_space<vmem>>, %arg7: memref<1x1xf32, #tpu.memory_space<smem>>, %arg8: memref<128x1xf32, #tpu.memory_space<vmem>>) attributes {dimension_semantics = [#tpu.dimension_semantics<parallel>], iteration_bounds = array<i64: 2>, scalar_prefetch = 0 : i64, scratch_operands = 0 : i64, tpu.core_type = #tpu.core_type<tc>, window_params = [{transform_indices = @transform_0, window_bounds = array<i64: 128, 128>}, {transform_indices = @transform_1, window_bounds = array<i64: 128, 128>}, {pipeline_mode = #tpu.pipeline_mode<synchronous>, transform_indices = @transform_2, window_bounds = array<i64: 128, 128>}, {pipeline_mode = #tpu.pipeline_mode<synchronous>, transform_indices = @transform_3, window_bounds = array<i64: 128, 128>}, {pipeline_mode = #tpu.pipeline_mode<synchronous>, transform_indices = @transform_4, window_bounds = array<i64: 1, 128>}, {pipeline_mode = #tpu.pipeline_mode<synchronous>, transform_indices = @transform_5, window_bounds = array<i64: 1, 128>}, {transform_indices = @transform_6, window_bounds = array<i64: 1, 1>}, {transform_indices = @transform_7, window_bounds = array<i64: 128, 1>}]} {
    %c0 = arith.constant 0 : index
    %c0_0 = arith.constant 0 : index
    %0 = vector.load %arg1[%c0, %c0_0] : memref<128x128xf32, #tpu.memory_space<vmem>>, vector<128x128xf32>
    %c0_1 = arith.constant 0 : index
    %c0_2 = arith.constant 0 : index
    %1 = vector.load %arg3[%c0_1, %c0_2] : memref<128x128xf32, #tpu.memory_space<vmem>>, vector<128x128xf32>
    %cst = arith.constant dense<0.000000e+00> : vector<128x128xf32>
    %2 = tpu.matmul %0, %1, %cst {dimension_numbers = #tpu.dot_dimension_numbers<[1], [0], [0], [1], [0, 0, 1, 1], [], []>} : vector<128x128xf32>, vector<128x128xf32>, vector<128x128xf32> -> vector<128x128xf32>
    %c0_3 = arith.constant 0 : index
    %c0_4 = arith.constant 0 : index
    %3 = vector.load %arg2[%c0_3, %c0_4] : memref<128x128xf32, #tpu.memory_space<vmem>>, vector<128x128xf32>
    %c0_5 = arith.constant 0 : index
    %c0_6 = arith.constant 0 : index
    %4 = vector.load %arg4[%c0_5, %c0_6] : memref<128x128xf32, #tpu.memory_space<vmem>>, vector<128x128xf32>
    %cst_7 = arith.constant dense<0.000000e+00> : vector<128x128xf32>
    %5 = tpu.matmul %3, %4, %cst_7 {dimension_numbers = #tpu.dot_dimension_numbers<[1], [0], [0], [1], [0, 0, 1, 1], [], []>} : vector<128x128xf32>, vector<128x128xf32>, vector<128x128xf32> -> vector<128x128xf32>
    %6 = arith.addf %2, %5 : vector<128x128xf32>
    %c0_8 = arith.constant 0 : index
    %c0_9 = arith.constant 0 : index
    %7 = vector.load %arg5[%c0_8, %c0_9] : memref<1x128xf32, #tpu.memory_space<vmem>>, vector<1x128xf32>
    %8 = vector.broadcast %7 : vector<1x128xf32> to vector<128x128xf32>
    %9 = arith.addf %6, %8 : vector<128x128xf32>
    %cst_10 = arith.constant 0.000000e+00 : f32
    %10 = vector.broadcast %cst_10 : f32 to vector<128x128xf32>
    %11 = arith.maximumf %9, %10 : vector<128x128xf32>
    %c0_11 = arith.constant 0 : index
    %c0_12 = arith.constant 0 : index
    %12 = vector.load %arg6[%c0_11, %c0_12] : memref<1x128xf32, #tpu.memory_space<vmem>>, vector<1x128xf32>
    %13 = vector.broadcast %12 : vector<1x128xf32> to vector<128x128xf32>
    %14 = arith.mulf %11, %13 : vector<128x128xf32>
    %cst_13 = arith.constant dense<0.000000e+00> : vector<128xf32>
    %15 = vector.multi_reduction <add>, %14, %cst_13 [1] : vector<128x128xf32> to vector<128xf32>
    %16 = vector.shape_cast %15 : vector<128xf32> to vector<128x1xf32>
    %c0_14 = arith.constant 0 : index
    %c0_15 = arith.constant 0 : index
    %17 = memref.load %arg7[%c0_14, %c0_15] : memref<1x1xf32, #tpu.memory_space<smem>>
    %18 = vector.broadcast %17 : f32 to vector<128x1xf32>
    %19 = arith.addf %16, %18 : vector<128x1xf32>
    %c0_16 = arith.constant 0 : index
    %c0_17 = arith.constant 0 : index
    %20 = vector.load %arg8[%c0_16, %c0_17] : memref<128x1xf32, #tpu.memory_space<vmem>>, vector<128x1xf32>
    tpu.vector_store %arg8[%c0_16, %c0_17], %19 {strides = array<i32>} : memref<128x1xf32, #tpu.memory_space<vmem>>, vector<128x1xf32>,
    return
  }
  func.func @transform_0(%arg0: i32) -> (i32, i32) {
    %c0_i32 = arith.constant 0 : i32
    %c0_i32_0 = arith.constant 0 : i32
    return %arg0, %c0_i32 : i32, i32
  }
  func.func @transform_1(%arg0: i32) -> (i32, i32) {
    %c0_i32 = arith.constant 0 : i32
    %c0_i32_0 = arith.constant 0 : i32
    return %arg0, %c0_i32 : i32, i32
  }
  func.func @transform_2(%arg0: i32) -> (i32, i32) {
    %c0_i32 = arith.constant 0 : i32
    %c0_i32_0 = arith.constant 0 : i32
    %c0_i32_1 = arith.constant 0 : i32
    return %c0_i32, %c0_i32_0 : i32, i32
  }
  func.func @transform_3(%arg0: i32) -> (i32, i32) {
    %c0_i32 = arith.constant 0 : i32
    %c0_i32_0 = arith.constant 0 : i32
    %c0_i32_1 = arith.constant 0 : i32
    return %c0_i32, %c0_i32_0 : i32, i32
  }
  func.func @transform_4(%arg0: i32) -> (i32, i32) {
    %c0_i32 = arith.constant 0 : i32
    %c0_i32_0 = arith.constant 0 : i32
    %c0_i32_1 = arith.constant 0 : i32
    return %c0_i32, %c0_i32_0 : i32, i32
  }
  func.func @transform_5(%arg0: i32) -> (i32, i32) {
    %c0_i32 = arith.constant 0 : i32
    %c0_i32_0 = arith.constant 0 : i32
    %c0_i32_1 = arith.constant 0 : i32
    return %c0_i32, %c0_i32_0 : i32, i32
  }
  func.func @transform_6(%arg0: i32) -> (i32, i32) {
    %c0_i32 = arith.constant 0 : i32
    %c0_i32_0 = arith.constant 0 : i32
    %c0_i32_1 = arith.constant 0 : i32
    return %c0_i32, %c0_i32_0 : i32, i32
  }
  func.func @transform_7(%arg0: i32) -> (i32, i32) {
    %c0_i32 = arith.constant 0 : i32
    %c0_i32_0 = arith.constant 0 : i32
    return %arg0, %c0_i32 : i32, i32
  }
}

module attributes {stable_mosaic.version = 11 : i64} {
  func.func @_link_predictor_kernel(%arg0: i32, %arg1: memref<128x128xf32, #tpu.memory_space<vmem>>, %arg2: memref<128x128xf32, #tpu.memory_space<vmem>>, %arg3: memref<128x128xf32, #tpu.memory_space<vmem>>, %arg4: memref<128x128xf32, #tpu.memory_space<vmem>>, %arg5: memref<1x128xf32, #tpu.memory_space<vmem>>, %arg6: memref<1x128xf32, #tpu.memory_space<vmem>>, %arg7: memref<1x1xf32, #tpu.memory_space<smem>>, %arg8: memref<128x1xf32, #tpu.memory_space<vmem>>) attributes {dimension_semantics = [#tpu.dimension_semantics<parallel>], iteration_bounds = array<i64: 2>, scalar_prefetch = 0 : i64, scratch_operands = 0 : i64, tpu.core_type = #tpu.core_type<tc>, window_params = [{transform_indices = @transform_0, window_bounds = array<i64: 128, 128>}, {transform_indices = @transform_1, window_bounds = array<i64: 128, 128>}, {pipeline_mode = #tpu.pipeline_mode<synchronous>, transform_indices = @transform_2, window_bounds = array<i64: 128, 128>}, {pipeline_mode = #tpu.pipeline_mode<synchronous>, transform_indices = @transform_3, window_bounds = array<i64: 128, 128>}, {pipeline_mode = #tpu.pipeline_mode<synchronous>, transform_indices = @transform_4, window_bounds = array<i64: 1, 128>}, {pipeline_mode = #tpu.pipeline_mode<synchronous>, transform_indices = @transform_5, window_bounds = array<i64: 1, 128>}, {transform_indices = @transform_6, window_bounds = array<i64: 1, 1>}, {transform_indices = @transform_7, window_bounds = array<i64: 128, 1>}]} {
    %c0 = arith.constant 0 : index
    %c0_0 = arith.constant 0 : index
    %0 = vector.load %arg1[%c0, %c0_0] : memref<128x128xf32, #tpu.memory_space<vmem>>, vector<128x128xf32>
    %c0_1 = arith.constant 0 : index
    %c0_2 = arith.constant 0 : index
    %1 = vector.load %arg3[%c0_1, %c0_2] : memref<128x128xf32, #tpu.memory_space<vmem>>, vector<128x128xf32>
    %cst = arith.constant dense<0.000000e+00> : vector<128x128xf32>
    %2 = tpu.matmul %0, %1, %cst {dimension_numbers = #tpu.dot_dimension_numbers<[1], [0], [0], [1], [0, 0, 1, 1], [], []>} : vector<128x128xf32>, vector<128x128xf32>, vector<128x128xf32> -> vector<128x128xf32>
    %c0_3 = arith.constant 0 : index
    %c0_4 = arith.constant 0 : index
    %3 = vector.load %arg2[%c0_3, %c0_4] : memref<128x128xf32, #tpu.memory_space<vmem>>, vector<128x128xf32>
    %c0_5 = arith.constant 0 : index
    %c0_6 = arith.constant 0 : index
    %4 = vector.load %arg4[%c0_5, %c0_6] : memref<128x128xf32, #tpu.memory_space<vmem>>, vector<128x128xf32>
    %cst_7 = arith.constant dense<0.000000e+00> : vector<128x128xf32>
    %5 = tpu.matmul %3, %4, %cst_7 {dimension_numbers = #tpu.dot_dimension_numbers<[1], [0], [0], [1], [0, 0, 1, 1], [], []>} : vector<128x128xf32>, vector<128x128xf32>, vector<128x128xf32> -> vector<128x128xf32>
    %6 = arith.addf %2, %5 : vector<128x128xf32>
    %c0_8 = arith.constant 0 : index
    %c0_9 = arith.constant 0 : index
    %7 = vector.load %arg5[%c0_8, %c0_9] : memref<1x128xf32, #tpu.memory_space<vmem>>, vector<1x128xf32>
    %8 = vector.broadcast %7 : vector<1x128xf32> to vector<128x128xf32>
    %9 = arith.addf %6, %8 : vector<128x128xf32>
    %cst_10 = arith.constant 0.000000e+00 : f32
    %10 = vector.broadcast %cst_10 : f32 to vector<128x128xf32>
    %11 = arith.maximumf %9, %10 : vector<128x128xf32>
    %c0_11 = arith.constant 0 : index
    %c0_12 = arith.constant 0 : index
    %12 = vector.load %arg6[%c0_11, %c0_12] : memref<1x128xf32, #tpu.memory_space<vmem>>, vector<1x128xf32>
    %13 = vector.broadcast %12 : vector<1x128xf32> to vector<128x128xf32>
    %14 = arith.mulf %11, %13 : vector<128x128xf32>
    %cst_13 = arith.constant dense<0.000000e+00> : vector<128xf32>
    %15 = vector.multi_reduction <add>, %14, %cst_13 [1] : vector<128x128xf32> to vector<128xf32>
    %16 = vector.shape_cast %15 : vector<128xf32> to vector<128x1xf32>
    %c0_14 = arith.constant 0 : index
    %c0_15 = arith.constant 0 : index
    %17 = memref.load %arg7[%c0_14, %c0_15] : memref<1x1xf32, #tpu.memory_space<smem>>
    %18 = vector.broadcast %17 : f32 to vector<128x1xf32>
    %19 = arith.addf %16, %18 : vector<128x1xf32>
    %c0_16 = arith.constant 0 : index
    %c0_17 = arith.constant 0 : index
    %20 = vector.load %arg8[%c0_16, %c0_17] : memref<128x1xf32, #tpu.memory_space<vmem>>, vector<128x1xf32>
    tpu.vector_store %arg8[%c0_16, %c0_17], %19 {strides = array<i32>} : memref<128x1xf32, #tpu.memory_space<vmem>>, vector<128x1xf32>,
    return
  }
  func.func @transform_0(%arg0: i32) -> (i32, i32) {
    %c0_i32 = arith.constant 0 : i32
    %c0_i32_0 = arith.constant 0 : i32
    return %arg0, %c0_i32 : i32, i32
  }
  func.func @transform_1(%arg0: i32) -> (i32, i32) {
    %c0_i32 = arith.constant 0 : i32
    %c0_i32_0 = arith.constant 0 : i32
    return %arg0, %c0_i32 : i32, i32
  }
  func.func @transform_2(%arg0: i32) -> (i32, i32) {
    %c0_i32 = arith.constant 0 : i32
    %c0_i32_0 = arith.constant 0 : i32
    %c0_i32_1 = arith.constant 0 : i32
    return %c0_i32, %c0_i32_0 : i32, i32
  }
  func.func @transform_3(%arg0: i32) -> (i32, i32) {
    %c0_i32 = arith.constant 0 : i32
    %c0_i32_0 = arith.constant 0 : i32
    %c0_i32_1 = arith.constant 0 : i32
    return %c0_i32, %c0_i32_0 : i32, i32
  }
  func.func @transform_4(%arg0: i32) -> (i32, i32) {
    %c0_i32 = arith.constant 0 : i32
    %c0_i32_0 = arith.constant 0 : i32
    %c0_i32_1 = arith.constant 0 : i32
    return %c0_i32, %c0_i32_0 : i32, i32
  }
  func.func @transform_5(%arg0: i32) -> (i32, i32) {
    %c0_i32 = arith.constant 0 : i32
    %c0_i32_0 = arith.constant 0 : i32
    %c0_i32_1 = arith.constant 0 : i32
    return %c0_i32, %c0_i32_0 : i32, i32
  }
  func.func @transform_6(%arg0: i32) -> (i32, i32) {
    %c0_i32 = arith.constant 0 : i32
    %c0_i32_0 = arith.constant 0 : i32
    %c0_i32_1 = arith.constant 0 : i32
    return %c0_i32, %c0_i32_0 : i32, i32
  }
  func.func @transform_7(%arg0: i32) -> (i32, i32) {
    %c0_i32 = arith.constant 0 : i32
    %c0_i32_0 = arith.constant 0 : i32
    return %arg0, %c0_i32 : i32, i32
  }
}

</mosaic_0001>

<bundles_post_ra>
// kernel: tpu_custom_call.1
= control target key start
LH: loop header
LB: loop body
LE: loop exit
PB: predicated region body
PF: predicated region fallthrough
CT: control target
= control target key end

     0   :  { %s1870_s0 = inlined_call_operand.hbm [shape: f32[256,128], index: 0, kind: input, shape index: {}]   ;;  %s1871_s1 = inlined_call_operand.hbm [shape: f32[256,128], index: 1, kind: input, shape index: {}]   ;;  %s1872_s2 = inlined_call_operand.hbm [shape: f32[128,128], index: 2, kind: input, shape index: {}]   ;;  %s1873_s3 = inlined_call_operand.hbm [shape: f32[128,128], index: 3, kind: input, shape index: {}]   ;;  %s1874_s4 = inlined_call_operand.vmem [shape: f32[1,128], index: 4, kind: input, shape index: {}]   ;;  %s1875_s5 = inlined_call_operand.vmem [shape: f32[1,128], index: 5, kind: input, shape index: {}]   ;;  %s1876_s6 = inlined_call_operand.<no memory space> [shape: f32[1,1], index: 6, kind: input, shape index: {}]   ;;  %s1877_s7 = inlined_call_operand.vmem [shape: f32[256,1], index: 7, kind: output, shape index: {}]  }
   0x1   :  { %1885 = sst [smem:[#allocation14_spill]] %s1870_s0 }
   0x2   :  { %1886 = sst [smem:[#allocation15_spill]] %s1872_s2 }
   0x3   :  { %12 = sst [smem:[#allocation2]] %s1876_s6 }
   0x4   :  { %13 = vsyncpa [#allocation4], 0 }
   0x5   :  { %15 = vsyncpa [#allocation4 + $0x1], 0 }
   0x6   :  { %16 = vsyncpa [#allocation6], 0 }
   0x7   :  { %18 = vsyncpa [#allocation6 + $0x1], 0 }
   0x8   :  { %19 = vsyncpa [#allocation9], 0  ;;  %s1525_s26 = smov 0   ;;  %s1527_s27 = smov 0  }
   0x9   :  { %s1529_s28 = smov 0   ;;  %s1531_s29 = smov 0  }
   0xa LB: > { %s1544_s6 = sadd.s32 4294967295, %s1474_s29   ;;  %p45_p0 = scmp.ne.s32.totalorder %s1466_s27, %s1462_s26  ;;  %s1474_s29 = sphi %s1531_s29, %s1904_s29   ;;  %s1470_s28 = sphi %s1529_s28, %s1903_s28   ;;  %s1466_s27 = sphi %s1527_s27, %s1902_s27   ;;  %s1462_s26 = sphi %s1525_s26, %s1901_s26  }
   0xb   : > { %p1878_p1 = scmp.eq.s32.totalorder %s1544_s6, 0  ;;  %p966_p2 = scmp.ge.s32.totalorder %s1474_s29, 1 }
   0xc   : > { %p213_p3 = scmp.lt.s32.totalorder %s1474_s29, 3  ;;  %s1476_s9 = smov [#allocation7]  }
   0xd   : > { %p1552_p4 = por %p1878_p1, %p45_p0  ;;  %s225_s10 = sshll.u32 %s1476_s9, 4  ;;  %s226_s10 = int_to_ptr.vmem [resolvable:$true] %s225_s10 }
   0xe   : > { %p1556_p5 = pnand %p966_p2, %p213_p3  ;;  %s1477_s12 = smov [#allocation8]  }
   0xf   : > { %s1887_s30 = scalar_select %p1552_p4, 1, 0 }
  0x10   : > { %s1888_s8 = scalar_select %p1556_p5, 1, 0 }
  0x11   : > { %p1257_p6 = pneg %p1556_p5  ;;  %s238_s13 = sshll.u32 %s1477_s12, 4  ;;  %s1568_s13 = int_to_ptr.vmem [resolvable:$true] %s238_s13 }
  0x12   : > { %s1890_s2 = sld [smem:[#allocation15_spill]] }
  0x13   : > { %p1564_p7 = pnand %p1257_p6, %p1878_p1 }
  0x15   : > { %p1314_p9 = pneg %p1564_p7 }
  0x18   : > { %s1312_s16 = scalar_lea.hbm %s1890_s2, 2048 }
  0x19   : > { %p1313_p8 = scmp.ne.s32.totalorder %s1890_s2, %s1312_s16  ;;  %p1319_p12 = scmp.lt.u32.totalorder %s1312_s16, %s1890_s2 }
  0x1b   : > { %p1315_p10 = pnand %p1314_p9, %p1313_p8 }
  0x1d   : > { %p1316_p11 = pneg %p1315_p10 }
  0x1f   : > { %p1321_p13 = pnand %p1319_p12, %p1316_p11 }
  0x21   : > { %1324 = shalt.err (!%p1321_p13)
}
  0x22   : > { %s1325_s21 = scalar_lea.vmem %s226_s10, 2048  ;;  %p1333_p6 = scmp.lt.s32.totalorder %s226_s10, %s226_s10 }
  0x23   : > { %p1326_p0 = scmp.ne.s32.totalorder %s226_s10, %s1325_s21  ;;  %p1334_p1 = scmp.lt.s32.totalorder %s1325_s21, %s1325_s21 }
  0x25   : > { %p1328_p2 = pnand %p1326_p0, %p1314_p9  ;;  %p1335_p4 = por %p1334_p1, %p1333_p6 }
  0x27   : > { %p1329_p3 = pneg %p1328_p2 }
  0x29   : > { %p1336_p5 = pnand %p1335_p4, %p1329_p3 }
  0x2b   : > { %1339 = shalt.err (!%p1336_p5)
}
  0x2c   : > { %s1881_s22 = smov 128   ;;  %s1883_s23 = smov 8  }
  0x2d   : > { %1260 = dma.hbm_to_vmem [thread:$0]  (!%p1564_p7), %s1890_s2, 2048, %s226_s10, [#allocation6], %s1881_s22, %s1881_s22, %s1883_s23  }
  0x2e   : > { %s1340_s12 = scalar_lea.hbm %s1873_s3, 2048 }
  0x2f   : > { %p1341_p1 = scmp.ne.s32.totalorder %s1873_s3, %s1340_s12  ;;  %p1347_p8 = scmp.lt.u32.totalorder %s1340_s12, %s1873_s3 }
  0x31   : > { %p1343_p4 = pnand %p1341_p1, %p1314_p9 }
  0x33   : > { %p1344_p5 = pneg %p1343_p4 }
  0x35   : > { %p1349_p10 = pnand %p1347_p8, %p1344_p5 }
  0x37   : > { %1352 = shalt.err (!%p1349_p10)
}
  0x38   : > { %s1353_s10 = scalar_lea.vmem %s1568_s13, 2048  ;;  %p1361_p0 = scmp.lt.s32.totalorder %s1568_s13, %s1568_s13 }
  0x39   : > { %p1354_p11 = scmp.ne.s32.totalorder %s1568_s13, %s1353_s10  ;;  %p1362_p2 = scmp.lt.s32.totalorder %s1353_s10, %s1353_s10 }
  0x3b   : > { %p1356_p12 = pnand %p1354_p11, %p1314_p9  ;;  %p1363_p3 = por %p1362_p2, %p1361_p0 }
  0x3d   : > { %p1357_p13 = pneg %p1356_p12 }
  0x3f   : > { %p1364_p6 = pnand %p1363_p3, %p1357_p13 }
  0x41   : > { %1367 = shalt.err (!%p1364_p6)
}
  0x42   : > { %1263 = dma.hbm_to_vmem [thread:$0]  (!%p1564_p7), %s1873_s3, 2048, %s1568_s13, [#allocation9], %s1881_s22, %s1881_s22, %s1883_s23  }
  0x43   : > { %s1624_s20 = sadd.s32 1, %s1474_s29   ;;  %s32_s11 = sadd.s32 1, %s1470_s28 }
  0x44   : > { %s29_s21 = ssub.s32 %s1474_s29, %s1624_s20  ;;  %p39_p9 = scmp.ne.s32.totalorder %s1470_s28, %s1466_s27 }
  0x45   : > { %p30_p1 = scmp.eq.s32.totalorder %s29_s21, 0  ;;  %p40_p4 = scmp.eq.s32.totalorder %s1474_s29, 0 }
  0x46   : > { %p1273_p5 = scmp.lt.s32.totalorder %s1474_s29, 2  ;;  %s261_s24 = sand.u32 1, %s1470_s28  }
  0x47   : > { %s1635_s25 = scalar_select %p30_p1, %s1470_s28, %s32_s11  }
  0x48   : > { %p41_p8 = por %p40_p4, %p39_p9  ;;  %s1637_s26 = sshll.u32 %s261_s24, 7 }
  0x49   : > { %s987_s9 = sshll.u32 %s1474_s29, 11  ;;  %s1891_s0 = sld [smem:[#allocation14_spill]] }
  0x4a   : > { %s265_s15 = scalar_lea.vmem [#allocation3], %s1637_s26  ;;  %p1646_p7 = pnand %p1273_p5, %p41_p8 }
  0x4b   : > { %s272_s16 = sshll.u32 %s265_s15, 4  ;;  %s1655_s19 = scalar_lea.hbm %s1871_s1, %s987_s9  ;;  %s1650_s16 = int_to_ptr.vmem [resolvable:$true] %s272_s16 }
  0x4c   : > { %s1657_s11 = scalar_lea.sflag [#allocation4], %s261_s24  ;;  %p1370_p11 = pneg %p1646_p7 }
  0x4f   : > { %s1643_s13 = scalar_lea.hbm %s1891_s0, %s987_s9  ;;  %s1373_s15 = scalar_lea.hbm %s1891_s0, 4096 }
  0x50   : > { %s1368_s21 = scalar_lea.hbm %s1643_s13, 2048  ;;  %p1374_p0 = scmp.lt.u32.totalorder %s1643_s13, %s1891_s0 }
  0x51   : > { %p1369_p10 = scmp.ne.s32.totalorder %s1643_s13, %s1368_s21  ;;  %p1375_p2 = scmp.lt.u32.totalorder %s1373_s15, %s1368_s21 }
  0x52   : > { %p1377_p6 = scmp.lt.u32.totalorder %s1368_s21, %s1643_s13 }
  0x53   : > { %p1371_p12 = pnand %p1370_p11, %p1369_p10  ;;  %p1376_p3 = por %p1375_p2, %p1374_p0 }
  0x55   : > { %p1372_p13 = pneg %p1371_p12  ;;  %p1378_p9 = por %p1377_p6, %p1376_p3 }
  0x57   : > { %p1379_p1 = pnand %p1378_p9, %p1372_p13 }
  0x59   : > { %1382 = shalt.err (!%p1379_p1)
}
  0x5a   : > { %s1383_s24 = scalar_lea.vmem %s1650_s16, 2048  ;;  %s1480_s9 = smov [#allocation3]  }
  0x5b   : > { %p1384_p4 = scmp.ne.s32.totalorder %s1650_s16, %s1383_s24  ;;  %s1388_s10 = sshll.u32 %s1480_s9, 4  ;;  %s1389_s10 = int_to_ptr.vmem [resolvable:$false] %s1388_s10 }
  0x5c   : > { %s1390_s22 = scalar_lea.vmem %s1389_s10, 4096  ;;  %p1391_p10 = scmp.lt.s32.totalorder %s1650_s16, %s1389_s10 }
  0x5d   : > { %p1386_p5 = pnand %p1384_p4, %p1370_p11  ;;  %p1392_p12 = scmp.lt.s32.totalorder %s1390_s22, %s1383_s24 }
  0x5f   : > { %p1387_p8 = pneg %p1386_p5  ;;  %p1393_p0 = por %p1392_p12, %p1391_p10 }
  0x61   : > { %p1394_p2 = pnand %p1393_p0, %p1387_p8 }
  0x63   : > { %1397 = shalt.err (!%p1394_p2)
}
  0x64   : > { %s1893_s23 = smov 8   ;;  %s1894_s18 = smov 128  }
  0x65   : > { %1267 = dma.hbm_to_vmem [thread:$0]  (!%p1646_p7), %s1643_s13, 2048, %s1650_s16, %s1657_s11, %s1894_s18, %s1894_s18, %s1893_s23  }
  0x66   : > { %s286_s21 = scalar_lea.vmem [#allocation5], %s1637_s26  ;;  %s282_s14 = sand.u32 1, %s1474_s29  }
  0x67   : > { %s293_s12 = sshll.u32 %s286_s21, 4  ;;  %s1692_s15 = scalar_lea.sflag [#allocation6], %s282_s14  ;;  %s1690_s12 = int_to_ptr.vmem [resolvable:$true] %s293_s12 }
  0x68   : > { %s1398_s24 = scalar_lea.hbm %s1655_s19, 2048  ;;  %s1403_s22 = scalar_lea.hbm %s1871_s1, 4096 }
  0x69   : > { %p1399_p13 = scmp.ne.s32.totalorder %s1655_s19, %s1398_s24  ;;  %p1404_p9 = scmp.lt.u32.totalorder %s1655_s19, %s1871_s1 }
  0x6a   : > { %p1405_p1 = scmp.lt.u32.totalorder %s1403_s22, %s1398_s24  ;;  %p1407_p5 = scmp.lt.u32.totalorder %s1398_s24, %s1655_s19 }
  0x6b   : > { %p1401_p3 = pnand %p1399_p13, %p1370_p11 }
  0x6c   : > { %p1406_p4 = por %p1405_p1, %p1404_p9 }
  0x6d   : > { %p1402_p6 = pneg %p1401_p3 }
  0x6e   : > { %p1408_p8 = por %p1407_p5, %p1406_p4 }
  0x70   : > { %p1409_p10 = pnand %p1408_p8, %p1402_p6 }
  0x72   : > { %1412 = shalt.err (!%p1409_p10)
}
  0x73   : > { %s1413_s29 = scalar_lea.vmem %s1690_s12, 2048  ;;  %s1481_s26 = smov [#allocation5]  }
  0x74   : > { %p1414_p12 = scmp.ne.s32.totalorder %s1690_s12, %s1413_s29  ;;  %s1418_s13 = sshll.u32 %s1481_s26, 4  ;;  %s1419_s13 = int_to_ptr.vmem [resolvable:$false] %s1418_s13 }
  0x75   : > { %s1420_s0 = scalar_lea.vmem %s1419_s13, 4096  ;;  %p1421_p13 = scmp.lt.s32.totalorder %s1690_s12, %s1419_s13 }
  0x76   : > { %p1416_p0 = pnand %p1414_p12, %p1370_p11  ;;  %p1422_p3 = scmp.lt.s32.totalorder %s1420_s0, %s1413_s29 }
  0x78   : > { %p1417_p2 = pneg %p1416_p0  ;;  %p1423_p9 = por %p1422_p3, %p1421_p13 }
  0x7a   : > { %p1424_p1 = pnand %p1423_p9, %p1417_p2 }
  0x7c   : > { %1427 = shalt.err (!%p1424_p1)
}
  0x7d   : > { %1270 = dma.hbm_to_vmem [thread:$0]  (!%p1646_p7), %s1655_s19, 2048, %s1690_s12, %s1692_s15, %s1894_s18, %s1894_s18, %s1893_s23  }
  0x7e   : > { %p1895_p11 = scmp.ne.s32.totalorder %s1888_s8, 0 }
  0x7f   : > { %s307_s2 = sand.u32 (!%p1895_p11), 1, %s1466_s27   ;;  %p1896_p6 = scmp.ne.s32.totalorder (!%p1895_p11), %s1887_s30, 0 }
  0x80   : > { %305 = sbr.rel (%p1895_p11) target bundleno = 579 (0x243), region = 48  ;;  %s977_s16 = sshll.u32 (!%p1895_p11), %s307_s2, 7 }
  0x81   : > { %s308_s11 = scalar_lea.sflag (!%p1895_p11), [#allocation4], %s307_s2  ;;  %s1724_s21 = scalar_lea.vmem (!%p1895_p11), [#allocation3], %s977_s16 }
  0x87   : > { %1445 = dma.done.wait (%p1896_p6), %s308_s11, 2048  }
  0x88   : > { %1447 = vsyncadd (%p1896_p6), %s308_s11, 4294965248  ;;  %s316_s17 = sand.u32 1, %s1544_s6   ;;  %s1731_s19 = scalar_lea.vmem [#allocation5], %s977_s16 }
  0x89   : > { %s317_s14 = scalar_lea.sflag [#allocation6], %s316_s17 }
  0x8a   : > { %1449 = dma.done.wait (%p1896_p6), %s317_s14, 2048  }
  0x8b   : > { %1451 = vsyncadd (%p1896_p6), %s317_s14, 4294965248  ;;  %p1897_p7 = scmp.eq.s32.totalorder %s1544_s6, 0 }
  0x8d   : > { %1453 = dma.done.wait (%p1897_p7), [#allocation6], 2048   ;;  %p1898_p4 = pmov %p1897_p7 }
  0x8f   : > { %1455 = vsyncadd (%p1898_p4), [#allocation6], 4294965248  ;;  %p1899_p5 = pmov %p1898_p4 }
  0x90   : > { %p1900_p8 = pmov %p1898_p4 }
  0x91   : > { %1457 = dma.done.wait (%p1899_p5), [#allocation9], 2048  }
  0x92   : > { %1459 = vsyncadd (%p1900_p8), [#allocation9], 4294965248  ;;  %v420_v0 = vld [vmem:[#allocation8] sm:$0xff]  ;;  %v421_v1 = vld [vmem:[#allocation8 + $0x8] sm:$0xff]  ;;  %s981_s12 = sshll.u32 %s1544_s6, 4  ;;  %s820_s15 = sld [smem:[#allocation2]] }
  0x93   : > { %v388_v2 = vld [vmem:[#allocation7] sm:$0xff]  ;;  %v1165_v3 = vpack.c.bf16 %v421_v1, %v420_v0  ;;  %v389_v4 = vld [vmem:[#allocation7 + $0x8] sm:$0xff]  ;;  %v422_v5 = vld [vmem:[#allocation8 + $0x10] sm:$0xff]  ;;  %p367_p10 = scmp.lt.s32.totalorder %s981_s12, 31  ;;  %vm838_vm0 = vcmask 7168  }
  0x94   : > { %v423_v6 = vld [vmem:[#allocation8 + $0x18] sm:$0xff]  ;;  %v1197_v7 = vpack.c.bf16 %v389_v4, %v388_v2  ;;  %v390_v9 = vld [vmem:[#allocation7 + $0x10] sm:$0xff]  ;;  %v424_v11 = vld [vmem:[#allocation8 + $0x20] sm:$0xff] }
  0x95   : > { %v1169_v8 = vpack.c.bf16 %v423_v6, %v422_v5  ;;  %v391_v10 = vld [vmem:[#allocation7 + $0x18] sm:$0xff]  ;;  %1166 = vmatprep.subr.bf16.mxu1 %v1165_v3  ;;  %v425_v13 = vld [vmem:[#allocation8 + $0x28] sm:$0xff]  ;;  %v392_v14 = vld [vmem:[#allocation7 + $0x20] sm:$0xff]  ;;  %s1906_s12 = smov (!%p367_p10, %s981_s12), 31 }
  0x96   : > { %v1201_v12 = vpack.c.bf16 %v391_v10, %v390_v9  ;;  %v393_v15 = vld [vmem:[#allocation7 + $0x28] sm:$0xff]  ;;  %1198 = vmatprep.subr.bf16.mxu0 %v1197_v7  ;;  %1168 = vmatpush3.bf16.msra.mxu1 %v1165_v3  ;;  %v1173_v16 = vpack.c.bf16 %v425_v13, %v424_v11  ;;  %v426_v18 = vld [vmem:[#allocation8 + $0x30] sm:$0xff]  ;;  %v427_v19 = vld [vmem:[#allocation8 + $0x38] sm:$0xff]  ;;  %s982_s24 = sshll.u32 %s1906_s12, 3 }
  0x97   : > { %1200 = vmatpush3.bf16.msra.mxu0 %v1197_v7  ;;  %1170 = vmatprep.subr.bf16.mxu1 %v1169_v8  ;;  %v1205_v17 = vpack.c.bf16 %v393_v15, %v392_v14  ;;  %v394_v20 = vld [vmem:[#allocation7 + $0x30] sm:$0xff]  ;;  %v395_v21 = vld [vmem:[#allocation7 + $0x38] sm:$0xff]  ;;  %v1177_v22 = vpack.c.bf16 %v427_v19, %v426_v18  ;;  %v428_v24 = vld [vmem:[#allocation8 + $0x40] sm:$0xff]  ;;  %s1823_s22 = scalar_lea.vmem %s1877_s7, %s982_s24 }
  0x98   : > { %1202 = vmatprep.subr.bf16.mxu0 %v1201_v12  ;;  %v1209_v23 = vpack.c.bf16 %v395_v21, %v394_v20  ;;  %v429_v25 = vld [vmem:[#allocation8 + $0x48] sm:$0xff]  ;;  %v404_v26 = vld [vmem:[%s1731_s19] sm:$0xff]  ;;  %v430_v32 = vld [vmem:[#allocation8 + $0x50] sm:$0xff] }
  0x99   : > { %v396_v27 = vld [vmem:[#allocation7 + $0x40] sm:$0xff]  ;;  %v397_v28 = vld [vmem:[#allocation7 + $0x48] sm:$0xff]  ;;  %1085 = vmatprep.mubr.f32.mxu1 %v404_v26  ;;  %v1181_v30 = vpack.c.bf16 %v429_v25, %v428_v24  ;;  %v431_v33 = vld [vmem:[#allocation8 + $0x58] sm:$0xff] }
  0x9a   : > { %1172 = vmatpush3.bf16.msra.mxu1 %v1169_v8  ;;  %v372_v29 = vld [vmem:[%s1724_s21] sm:$0xff]  ;;  %v1213_v31 = vpack.c.bf16 %v397_v28, %v396_v27  ;;  %v398_v34 = vld [vmem:[#allocation7 + $0x50] sm:$0xff]  ;;  %v399_v35 = vld [vmem:[#allocation7 + $0x58] sm:$0xff]  ;;  %v1185_v36 = vpack.c.bf16 %v431_v33, %v430_v32 }
  0x9b   : > { %1204 = vmatpush3.bf16.msra.mxu0 %v1201_v12  ;;  %1174 = vmatprep.subr.bf16.mxu1 %v1173_v16  ;;  %v1217_v37 = vpack.c.bf16 %v399_v35, %v398_v34  ;;  %v432_v38 = vld [vmem:[#allocation8 + $0x60] sm:$0xff]  ;;  %v433_v39 = vld [vmem:[#allocation8 + $0x68] sm:$0xff]  ;;  %v434_v44 = vld [vmem:[#allocation8 + $0x70] sm:$0xff] }
  0x9c   : > { %1206 = vmatprep.subr.bf16.mxu0 %v1205_v17  ;;  %1141 = vmatprep.mubr.f32.mxu0 %v372_v29  ;;  %v400_v40 = vld [vmem:[#allocation7 + $0x60] sm:$0xff]  ;;  %v401_v41 = vld [vmem:[#allocation7 + $0x68] sm:$0xff]  ;;  %v1189_v42 = vpack.c.bf16 %v433_v39, %v432_v38  ;;  %v435_v45 = vld [vmem:[#allocation8 + $0x78] sm:$0xff] }
  0x9d   : > { %v1221_v43 = vpack.c.bf16 %v401_v41, %v400_v40  ;;  %v402_v46 = vld [vmem:[#allocation7 + $0x70] sm:$0xff]  ;;  %v403_v47 = vld [vmem:[#allocation7 + $0x78] sm:$0xff]  ;;  %v1193_v48 = vpack.c.bf16 %v435_v45, %v434_v44  ;;  %v405_v50 = vld [vmem:[%s1731_s19 + $0x8] sm:$0xff] }
  0x9e   : > { %1176 = vmatpush3.bf16.msra.mxu1 %v1173_v16  ;;  %v1225_v49 = vpack.c.bf16 %v403_v47, %v402_v46  ;;  %v373_v51 = vld [vmem:[%s1724_s21 + $0x8] sm:$0xff]  ;;  %v406_v52 = vld [vmem:[%s1731_s19 + $0x10] sm:$0xff]  ;;  %v407_v54 = vld [vmem:[%s1731_s19 + $0x18] sm:$0xff] }
  0x9f   : > { %1208 = vmatpush3.bf16.msra.mxu0 %v1205_v17  ;;  %1178 = vmatprep.subr.bf16.mxu1 %v1177_v22  ;;  %v374_v53 = vld [vmem:[%s1724_s21 + $0x10] sm:$0xff]  ;;  %v375_v55 = vld [vmem:[%s1724_s21 + $0x18] sm:$0xff]  ;;  %v408_v56 = vld [vmem:[%s1731_s19 + $0x20] sm:$0xff] }
  0xa0   : > { %1210 = vmatprep.subr.bf16.mxu0 %v1209_v23  ;;  %v376_v57 = vld [vmem:[%s1724_s21 + $0x20] sm:$0xff]  ;;  %v409_v58 = vld [vmem:[%s1731_s19 + $0x28] sm:$0xff]  ;;  %v410_v60 = vld [vmem:[%s1731_s19 + $0x30] sm:$0xff] }
  0xa1   : > { %v377_v59 = vld [vmem:[%s1724_s21 + $0x28] sm:$0xff]  ;;  %v378_v61 = vld [vmem:[%s1724_s21 + $0x30] sm:$0xff]  ;;  %v411_v62 = vld [vmem:[%s1731_s19 + $0x38] sm:$0xff] }
  0xa2   : > { %1180 = vmatpush3.bf16.msra.mxu1 %v1177_v22  ;;  %v379_v63 = vld [vmem:[%s1724_s21 + $0x38] sm:$0xff]  ;;  %v412_v0 = vld [vmem:[%s1731_s19 + $0x40] sm:$0xff]  ;;  %v413_v2 = vld [vmem:[%s1731_s19 + $0x48] sm:$0xff] }
  0xa3   : > { %1212 = vmatpush3.bf16.msra.mxu0 %v1209_v23  ;;  %1182 = vmatprep.subr.bf16.mxu1 %v1181_v30  ;;  %v380_v1 = vld [vmem:[%s1724_s21 + $0x40] sm:$0xff]  ;;  %v381_v3 = vld [vmem:[%s1724_s21 + $0x48] sm:$0xff]  ;;  %v414_v4 = vld [vmem:[%s1731_s19 + $0x50] sm:$0xff] }
  0xa4   : > { %1214 = vmatprep.subr.bf16.mxu0 %v1213_v31  ;;  %v382_v5 = vld [vmem:[%s1724_s21 + $0x50] sm:$0xff]  ;;  %v415_v6 = vld [vmem:[%s1731_s19 + $0x58] sm:$0xff]  ;;  %v416_v8 = vld [vmem:[%s1731_s19 + $0x60] sm:$0xff] }
  0xa5   : > { %v383_v7 = vld [vmem:[%s1724_s21 + $0x58] sm:$0xff]  ;;  %v384_v9 = vld [vmem:[%s1724_s21 + $0x60] sm:$0xff]  ;;  %v417_v10 = vld [vmem:[%s1731_s19 + $0x68] sm:$0xff] }
  0xa6   : > { %1184 = vmatpush3.bf16.msra.mxu1 %v1181_v30  ;;  %v385_v11 = vld [vmem:[%s1724_s21 + $0x68] sm:$0xff]  ;;  %v418_v12 = vld [vmem:[%s1731_s19 + $0x70] sm:$0xff]  ;;  %v419_v14 = vld [vmem:[%s1731_s19 + $0x78] sm:$0xff] }
  0xa7   : > { %1216 = vmatpush3.bf16.msra.mxu0 %v1213_v31  ;;  %1186 = vmatprep.subr.bf16.mxu1 %v1185_v36  ;;  %v386_v13 = vld [vmem:[%s1724_s21 + $0x70] sm:$0xff]  ;;  %v387_v15 = vld [vmem:[%s1724_s21 + $0x78] sm:$0xff]  ;;  %v1780_v19 = vld [vmem:[%s1874_s4] ss:$0 sm:$0xff] }
  0xa8   : > { %1218 = vmatprep.subr.bf16.mxu0 %v1217_v37  ;;  %v1787_v28 = vld [vmem:[%s1875_s5] ss:$0 sm:$0xff] }
  0xaa   : > { %1188 = vmatpush3.bf16.msra.mxu1 %v1185_v36 }
  0xab   : > { %1220 = vmatpush3.bf16.msra.mxu0 %v1217_v37  ;;  %1190 = vmatprep.subr.bf16.mxu1 %v1189_v42 }
  0xac   : > { %1222 = vmatprep.subr.bf16.mxu0 %v1221_v43 }
  0xae   : > { %1192 = vmatpush3.bf16.msra.mxu1 %v1189_v42 }
  0xaf   : > { %1224 = vmatpush3.bf16.msra.mxu0 %v1221_v43  ;;  %1194 = vmatprep.subr.bf16.mxu1 %v1193_v48 }
  0xb0   : > { %1226 = vmatprep.subr.bf16.mxu0 %v1225_v49 }
  0xb2   : > { %1196 = vmatpush3.bf16.msra.mxu1 %v1193_v48 }
  0xb3   : > { %1228 = vmatpush3.bf16.msra.mxu0 %v1225_v49 }
  0xb5   : > { %1086 = vmatmul.mubr.f32.vlgmr.msra.gmra.mrb[0].mxu1 %v405_v50 }
  0xb6   : > { %1142 = vmatmul.mubr.f32.vlgmr.msra.gmra.mrb[0].mxu0 %v373_v51  ;;  %1088 = vmatprep.mubr.f32.mxu1 %v406_v52 }
  0xb7   : > { %1144 = vmatprep.mubr.f32.mxu0 %v374_v53 }
  0xb9   : > { %1089 = vmatmul.mubr.f32.gmra.mrb[2].mxu1 %v407_v54 }
  0xba   : > { %1145 = vmatmul.mubr.f32.gmra.mrb[2].mxu0 %v375_v55  ;;  %1091 = vmatprep.mubr.f32.mxu1 %v408_v56 }
  0xbb   : > { %1147 = vmatprep.mubr.f32.mxu0 %v376_v57 }
  0xbd   : > { %1092 = vmatmul.mubr.f32.gmra.mrb[4].mxu1 %v409_v58 }
  0xbe   : > { %1148 = vmatmul.mubr.f32.gmra.mrb[4].mxu0 %v377_v59  ;;  %1094 = vmatprep.mubr.f32.mxu1 %v410_v60 }
  0xbf   : > { %1150 = vmatprep.mubr.f32.mxu0 %v378_v61 }
  0xc1   : > { %1095 = vmatmul.mubr.f32.gmra.mrb[6].mxu1 %v411_v62 }
  0xc2   : > { %1151 = vmatmul.mubr.f32.gmra.mrb[6].mxu0 %v379_v63  ;;  %1097 = vmatprep.mubr.f32.mxu1 %v412_v0 }
  0xc3   : > { %1153 = vmatprep.mubr.f32.mxu0 %v380_v1 }
  0xc5   : > { %1098 = vmatmul.mubr.f32.gmra.mrb[8].mxu1 %v413_v2 }
  0xc6   : > { %1154 = vmatmul.mubr.f32.gmra.mrb[8].mxu0 %v381_v3  ;;  %1100 = vmatprep.mubr.f32.mxu1 %v414_v4 }
  0xc7   : > { %1156 = vmatprep.mubr.f32.mxu0 %v382_v5 }
  0xc9   : > { %1101 = vmatmul.mubr.f32.gmra.mrb[10].mxu1 %v415_v6 }
  0xca   : > { %1157 = vmatmul.mubr.f32.gmra.mrb[10].mxu0 %v383_v7  ;;  %1103 = vmatprep.mubr.f32.mxu1 %v416_v8 }
  0xcb   : > { %1159 = vmatprep.mubr.f32.mxu0 %v384_v9 }
  0xcd   : > { %1104 = vmatmul.mubr.f32.gmra.mrb[12].mxu1 %v417_v10 }
  0xce   : > { %1160 = vmatmul.mubr.f32.gmra.mrb[12].mxu0 %v385_v11  ;;  %1106 = vmatprep.mubr.f32.mxu1 %v418_v12 }
  0xcf   : > { %1162 = vmatprep.mubr.f32.mxu0 %v386_v13 }
  0xd1   : > { %1107 = vmatmul.mubr.f32.gmra.mrb[14].mxu1 %v419_v14 }
  0xd2   : > { %1163 = vmatmul.mubr.f32.gmra.mrb[14].mxu0 %v387_v15 }
 0x188   : > { %v1087_v16 = vpop.f32.mrb[0].mxu1 }
 0x189   : > { %v1143_v17 = vpop.f32.mrb[0].mxu0  ;;  %v502_v18 = vpop.f32.mrb[1].mxu1 }
 0x18a   : > { %v653_v20 = vadd.f32 %v1143_v17, %v1087_v16  ;;  %v647_v21 = vpop.f32.mrb[1].mxu0 }
 0x18b   : > { %v648_v22 = vadd.f32 %v647_v21, %v502_v18 }
 0x18c   : > { %v1090_v23 = vpop.f32.mrb[2].mxu1  ;;  %v734_v24 = vadd.f32 %v1780_v19, %v653_v20 }
 0x18d   : > { %v733_v25 = vadd.f32 %v1780_v19, %v648_v22  ;;  %v1146_v26 = vpop.f32.mrb[2].mxu0  ;;  %v512_v27 = vpop.f32.mrb[3].mxu1 }
 0x18e   : > { %v663_v29 = vadd.f32 %v1146_v26, %v1090_v23  ;;  %v657_v30 = vpop.f32.mrb[3].mxu0  ;;  %v750_v31 = vmax.f32 %v734_v24, 0.0 }
 0x18f   : > { %v658_v32 = vadd.f32 %v657_v30, %v512_v27  ;;  %v749_v33 = vmax.f32 %v733_v25, 0.0 }
 0x190   : > { %v773_v34 = vmul.f32 %v1787_v28, %v750_v31  ;;  %v1093_v35 = vpop.f32.mrb[4].mxu1  ;;  %v736_v36 = vadd.f32 %v1780_v19, %v663_v29 }
 0x191   : > { %v735_v37 = vadd.f32 %v1780_v19, %v658_v32  ;;  %v1149_v38 = vpop.f32.mrb[4].mxu0  ;;  %v522_v39 = vpop.f32.mrb[5].mxu1  ;;  %v772_v47 = vmul.f32 %v1787_v28, %v749_v33 }
 0x192   : > { %790 = vadd.xlane.f32.xlu0 %v773_v34  ;;  %v673_v40 = vadd.f32 %v1149_v38, %v1093_v35  ;;  %v667_v41 = vpop.f32.mrb[5].mxu0  ;;  %v752_v42 = vmax.f32 %v736_v36, 0.0 }
 0x193   : > { %v668_v43 = vadd.f32 %v667_v41, %v522_v39  ;;  %v751_v44 = vmax.f32 %v735_v37, 0.0 }
 0x194   : > { %v738_v45 = vadd.f32 %v1780_v19, %v673_v40  ;;  %v775_v46 = vmul.f32 %v1787_v28, %v752_v42  ;;  %v1096_v48 = vpop.f32.mrb[6].mxu1 }
 0x195   : > { %v737_v49 = vadd.f32 %v1780_v19, %v668_v43  ;;  %v1152_v50 = vpop.f32.mrb[6].mxu0  ;;  %v532_v51 = vpop.f32.mrb[7].mxu1  ;;  %v774_v58 = vmul.f32 %v1787_v28, %v751_v44 }
 0x196   : > { %v754_v52 = vmax.f32 %v738_v45, 0.0  ;;  %794 = vadd.xlane.f32.xlu1 %v775_v46  ;;  %788 = vadd.xlane.f32.xlu0 %v772_v47  ;;  %v683_v53 = vadd.f32 %v1152_v50, %v1096_v48  ;;  %v677_v54 = vpop.f32.mrb[7].mxu0 }
 0x197   : > { %v753_v55 = vmax.f32 %v737_v49, 0.0  ;;  %v678_v56 = vadd.f32 %v677_v54, %v532_v51 }
 0x198   : > { %v740_v57 = vadd.f32 %v1780_v19, %v683_v53  ;;  %v1099_v59 = vpop.f32.mrb[8].mxu1  ;;  %v777_v3 = vmul.f32 %v1787_v28, %v754_v52 }
 0x199   : > { %v739_v60 = vadd.f32 %v1780_v19, %v678_v56  ;;  %v1155_v61 = vpop.f32.mrb[8].mxu0  ;;  %v542_v62 = vpop.f32.mrb[9].mxu1  ;;  %v776_v63 = vmul.f32 %v1787_v28, %v753_v55 }
 0x19a   : > { %v756_v0 = vmax.f32 %v740_v57, 0.0  ;;  %792 = vadd.xlane.f32.xlu1 %v774_v58  ;;  %v693_v1 = vadd.f32 %v1155_v61, %v1099_v59  ;;  %v687_v2 = vpop.f32.mrb[9].mxu0 }
 0x19b   : > { %v755_v4 = vmax.f32 %v739_v60, 0.0  ;;  %v688_v5 = vadd.f32 %v687_v2, %v542_v62  ;;  %796 = vadd.xlane.f32.xlu0 %v776_v63 }
 0x19c   : > { %v742_v6 = vadd.f32 %v1780_v19, %v693_v1  ;;  %v1102_v7 = vpop.f32.mrb[10].mxu1  ;;  %v779_v15 = vmul.f32 %v1787_v28, %v756_v0 }
 0x19d   : > { %v741_v8 = vadd.f32 %v1780_v19, %v688_v5  ;;  %v1158_v9 = vpop.f32.mrb[10].mxu0  ;;  %v552_v10 = vpop.f32.mrb[11].mxu1  ;;  %v778_v11 = vmul.f32 %v1787_v28, %v755_v4 }
 0x19e   : > { %v758_v12 = vmax.f32 %v742_v6, 0.0  ;;  %798 = vadd.xlane.f32.xlu1 %v777_v3  ;;  %v703_v13 = vadd.f32 %v1158_v9, %v1102_v7  ;;  %v697_v14 = vpop.f32.mrb[11].mxu0 }
 0x19f   : > { %v757_v16 = vmax.f32 %v741_v8, 0.0  ;;  %v698_v17 = vadd.f32 %v697_v14, %v552_v10  ;;  %800 = vadd.xlane.f32.xlu0 %v778_v11 }
 0x1a0   : > { %v744_v18 = vadd.f32 %v1780_v19, %v703_v13  ;;  %v1105_v20 = vpop.f32.mrb[12].mxu1  ;;  %v781_v29 = vmul.f32 %v1787_v28, %v758_v12 }
 0x1a1   : > { %v743_v21 = vadd.f32 %v1780_v19, %v698_v17  ;;  %v1161_v22 = vpop.f32.mrb[12].mxu0  ;;  %v562_v23 = vpop.f32.mrb[13].mxu1  ;;  %v780_v24 = vmul.f32 %v1787_v28, %v757_v16 }
 0x1a2   : > { %v760_v25 = vmax.f32 %v744_v18, 0.0  ;;  %802 = vadd.xlane.f32.xlu1 %v779_v15  ;;  %v713_v26 = vadd.f32 %v1161_v22, %v1105_v20  ;;  %v707_v27 = vpop.f32.mrb[13].mxu0 }
 0x1a3   : > { %v759_v30 = vmax.f32 %v743_v21, 0.0  ;;  %v708_v31 = vadd.f32 %v707_v27, %v562_v23  ;;  %804 = vadd.xlane.f32.xlu0 %v780_v24 }
 0x1a4   : > { %v746_v32 = vadd.f32 %v1780_v19, %v713_v26  ;;  %v1108_v33 = vpop.f32.mrb[14].mxu1  ;;  %v783_v41 = vmul.f32 %v1787_v28, %v760_v25 }
 0x1a5   : > { %v745_v34 = vadd.f32 %v1780_v19, %v708_v31  ;;  %v1164_v35 = vpop.f32.mrb[14].mxu0  ;;  %v572_v36 = vpop.f32.mrb[15].mxu1  ;;  %v782_v37 = vmul.f32 %v1787_v28, %v759_v30 }
 0x1a6   : > { %v762_v38 = vmax.f32 %v746_v32, 0.0  ;;  %806 = vadd.xlane.f32.xlu1 %v781_v29  ;;  %v723_v39 = vadd.f32 %v1164_v35, %v1108_v33  ;;  %v717_v40 = vpop.f32.mrb[15].mxu0 }
 0x1a7   : > { %v761_v42 = vmax.f32 %v745_v34, 0.0  ;;  %v718_v43 = vadd.f32 %v717_v40, %v572_v36  ;;  %808 = vadd.xlane.f32.xlu0 %v782_v37 }
 0x1a8   : > { %v748_v44 = vadd.f32 %v1780_v19, %v723_v39  ;;  %v785_v48 = vmul.f32 %v1787_v28, %v762_v38 }
 0x1a9   : > { %v747_v45 = vadd.f32 %v1780_v19, %v718_v43  ;;  %v784_v46 = vmul.f32 %v1787_v28, %v761_v42  ;;  %v821_v19 = vstv %s820_s15 }
 0x1aa   : > { %v764_v47 = vmax.f32 %v748_v44, 0.0  ;;  %810 = vadd.xlane.f32.xlu1 %v783_v41 }
 0x1ab   : > { %v763_v49 = vmax.f32 %v747_v45, 0.0  ;;  %812 = vadd.xlane.f32.xlu0 %v784_v46 }
 0x1ac   : > { %v787_v51 = vmul.f32 %v1787_v28, %v764_v47 }
 0x1ad   : > { %v786_v50 = vmul.f32 %v1787_v28, %v763_v49 }
 0x1ae   : > { %814 = vadd.xlane.f32.xlu1 %v785_v48 }
 0x1af   : > { %816 = vadd.xlane.f32.xlu0 %v786_v50 }
 0x1b2   : > { %818 = vadd.xlane.f32.xlu1 %v787_v51 }
 0x21f   : > { %v791_v28 = vpop.xlane.xlu0 %790 }
 0x220   : > { %v823_v52 = vadd.f32 %v821_v19, %v791_v28 }
 0x222   : > { %840 = vst.msk [vmem:[%s1823_s22 + $0x8] sm:$0xff] %vm838_vm0, %v823_v52 }
 0x223   : > { %v795_v53 = vpop.xlane.xlu1 %794  ;;  %v789_v54 = vpop.xlane.xlu0 %788 }
 0x224   : > { %v825_v55 = vadd.f32 %v821_v19, %v795_v53  ;;  %v822_v56 = vadd.f32 %v821_v19, %v789_v54 }
 0x226   : > { %842 = vst.msk [vmem:[%s1823_s22 + $0x18] sm:$0xff] %vm838_vm0, %v825_v55  ;;  %839 = vst.msk [vmem:[%s1823_s22] sm:$0xff] %vm838_vm0, %v822_v56 }
 0x227   : > { %v793_v57 = vpop.xlane.xlu1 %792 }
 0x228   : > { %v824_v58 = vadd.f32 %v821_v19, %v793_v57  ;;  %v797_v59 = vpop.xlane.xlu0 %796 }
 0x229   : > { %v826_v60 = vadd.f32 %v821_v19, %v797_v59 }
 0x22a   : > { %841 = vst.msk [vmem:[%s1823_s22 + $0x10] sm:$0xff] %vm838_vm0, %v824_v58 }
 0x22b   : > { %843 = vst.msk [vmem:[%s1823_s22 + $0x20] sm:$0xff] %vm838_vm0, %v826_v60  ;;  %v799_v61 = vpop.xlane.xlu1 %798 }
 0x22c   : > { %v827_v62 = vadd.f32 %v821_v19, %v799_v61  ;;  %v801_v63 = vpop.xlane.xlu0 %800 }
 0x22d   : > { %v828_v0 = vadd.f32 %v821_v19, %v801_v63 }
 0x22e   : > { %844 = vst.msk [vmem:[%s1823_s22 + $0x28] sm:$0xff] %vm838_vm0, %v827_v62 }
 0x22f   : > { %845 = vst.msk [vmem:[%s1823_s22 + $0x30] sm:$0xff] %vm838_vm0, %v828_v0  ;;  %v803_v1 = vpop.xlane.xlu1 %802 }
 0x230   : > { %v829_v2 = vadd.f32 %v821_v19, %v803_v1  ;;  %v805_v3 = vpop.xlane.xlu0 %804 }
 0x231   : > { %v830_v4 = vadd.f32 %v821_v19, %v805_v3 }
 0x232   : > { %846 = vst.msk [vmem:[%s1823_s22 + $0x38] sm:$0xff] %vm838_vm0, %v829_v2 }
 0x233   : > { %847 = vst.msk [vmem:[%s1823_s22 + $0x40] sm:$0xff] %vm838_vm0, %v830_v4  ;;  %v807_v5 = vpop.xlane.xlu1 %806 }
 0x234   : > { %v831_v6 = vadd.f32 %v821_v19, %v807_v5  ;;  %v809_v7 = vpop.xlane.xlu0 %808 }
 0x235   : > { %v832_v8 = vadd.f32 %v821_v19, %v809_v7 }
 0x236   : > { %848 = vst.msk [vmem:[%s1823_s22 + $0x48] sm:$0xff] %vm838_vm0, %v831_v6 }
 0x237   : > { %849 = vst.msk [vmem:[%s1823_s22 + $0x50] sm:$0xff] %vm838_vm0, %v832_v8  ;;  %v811_v9 = vpop.xlane.xlu1 %810 }
 0x238   : > { %v833_v10 = vadd.f32 %v821_v19, %v811_v9  ;;  %v813_v11 = vpop.xlane.xlu0 %812 }
 0x239   : > { %v834_v12 = vadd.f32 %v821_v19, %v813_v11 }
 0x23a   : > { %850 = vst.msk [vmem:[%s1823_s22 + $0x58] sm:$0xff] %vm838_vm0, %v833_v10 }
 0x23b   : > { %851 = vst.msk [vmem:[%s1823_s22 + $0x60] sm:$0xff] %vm838_vm0, %v834_v12  ;;  %v815_v13 = vpop.xlane.xlu1 %814 }
 0x23c   : > { %v835_v14 = vadd.f32 %v821_v19, %v815_v13  ;;  %v817_v15 = vpop.xlane.xlu0 %816 }
 0x23d   : > { %v836_v16 = vadd.f32 %v821_v19, %v817_v15 }
 0x23e   : > { %852 = vst.msk [vmem:[%s1823_s22 + $0x68] sm:$0xff] %vm838_vm0, %v835_v14 }
 0x23f   : > { %853 = vst.msk [vmem:[%s1823_s22 + $0x70] sm:$0xff] %vm838_vm0, %v836_v16  ;;  %v819_v17 = vpop.xlane.xlu1 %818 }
 0x240   : > { %v837_v18 = vadd.f32 %v821_v19, %v819_v17 }
 0x242   : > { %854 = vst.msk [vmem:[%s1823_s22 + $0x78] sm:$0xff] %vm838_vm0, %v837_v18 }
 0x243 PF: > { %p22_p12 = scmp.ge.s32.totalorder %s1624_s20, 4   ;;  %s1901_s26 = smov %s1466_s27 }
 0x244   : > { %s1902_s27 = smov %s1470_s28  ;;  %s1903_s28 = smov %s1635_s25 }
 0x245   : > { %s1904_s29 = smov %s1624_s20  ;;  %24 = sbr.rel (!%p22_p12) target bundleno = 10 (0xa), region = 109 }
 0x24c   :  { %877 = vsyncpa [#allocation4], 1 }
 0x24d   :  { %879 = vsyncpa [#allocation4 + $0x1], 1 }
 0x24e   :  { %880 = vsyncpa [#allocation6], 1 }
 0x24f   :  { %882 = vsyncpa [#allocation6 + $0x1], 1 }
 0x250   :  { %883 = vsyncpa [#allocation9], 1 }

// kernel: tpu_custom_call.1
= control target key start
LH: loop header
LB: loop body
LE: loop exit
PB: predicated region body
PF: predicated region fallthrough
CT: control target
= control target key end

     0   :  { %s1870_s0 = inlined_call_operand.hbm [shape: f32[256,128], index: 0, kind: input, shape index: {}]   ;;  %s1871_s1 = inlined_call_operand.hbm [shape: f32[256,128], index: 1, kind: input, shape index: {}]   ;;  %s1872_s2 = inlined_call_operand.hbm [shape: f32[128,128], index: 2, kind: input, shape index: {}]   ;;  %s1873_s3 = inlined_call_operand.hbm [shape: f32[128,128], index: 3, kind: input, shape index: {}]   ;;  %s1874_s4 = inlined_call_operand.vmem [shape: f32[1,128], index: 4, kind: input, shape index: {}]   ;;  %s1875_s5 = inlined_call_operand.vmem [shape: f32[1,128], index: 5, kind: input, shape index: {}]   ;;  %s1876_s6 = inlined_call_operand.<no memory space> [shape: f32[1,1], index: 6, kind: input, shape index: {}]   ;;  %s1877_s7 = inlined_call_operand.vmem [shape: f32[256,1], index: 7, kind: output, shape index: {}]  }
   0x1   :  { %1885 = sst [smem:[#allocation14_spill]] %s1870_s0 }
   0x2   :  { %1886 = sst [smem:[#allocation15_spill]] %s1872_s2 }
   0x3   :  { %12 = sst [smem:[#allocation2]] %s1876_s6 }
   0x4   :  { %13 = vsyncpa [#allocation4], 0 }
   0x5   :  { %15 = vsyncpa [#allocation4 + $0x1], 0 }
   0x6   :  { %16 = vsyncpa [#allocation6], 0 }
   0x7   :  { %18 = vsyncpa [#allocation6 + $0x1], 0 }
   0x8   :  { %19 = vsyncpa [#allocation9], 0  ;;  %s1525_s26 = smov 0   ;;  %s1527_s27 = smov 0  }
   0x9   :  { %s1529_s28 = smov 0   ;;  %s1531_s29 = smov 0  }
   0xa LB: > { %s1544_s6 = sadd.s32 4294967295, %s1474_s29   ;;  %p45_p0 = scmp.ne.s32.totalorder %s1466_s27, %s1462_s26  ;;  %s1474_s29 = sphi %s1531_s29, %s1904_s29   ;;  %s1470_s28 = sphi %s1529_s28, %s1903_s28   ;;  %s1466_s27 = sphi %s1527_s27, %s1902_s27   ;;  %s1462_s26 = sphi %s1525_s26, %s1901_s26  }
   0xb   : > { %p1878_p1 = scmp.eq.s32.totalorder %s1544_s6, 0  ;;  %p966_p2 = scmp.ge.s32.totalorder %s1474_s29, 1 }
   0xc   : > { %p213_p3 = scmp.lt.s32.totalorder %s1474_s29, 3  ;;  %s1476_s9 = smov [#allocation7]  }
   0xd   : > { %p1552_p4 = por %p1878_p1, %p45_p0  ;;  %s225_s10 = sshll.u32 %s1476_s9, 4  ;;  %s226_s10 = int_to_ptr.vmem [resolvable:$true] %s225_s10 }
   0xe   : > { %p1556_p5 = pnand %p966_p2, %p213_p3  ;;  %s1477_s12 = smov [#allocation8]  }
   0xf   : > { %s1887_s30 = scalar_select %p1552_p4, 1, 0 }
  0x10   : > { %s1888_s8 = scalar_select %p1556_p5, 1, 0 }
  0x11   : > { %p1257_p6 = pneg %p1556_p5  ;;  %s238_s13 = sshll.u32 %s1477_s12, 4  ;;  %s1568_s13 = int_to_ptr.vmem [resolvable:$true] %s238_s13 }
  0x12   : > { %s1890_s2 = sld [smem:[#allocation15_spill]] }
  0x13   : > { %p1564_p7 = pnand %p1257_p6, %p1878_p1 }
  0x15   : > { %p1314_p9 = pneg %p1564_p7 }
  0x18   : > { %s1312_s16 = scalar_lea.hbm %s1890_s2, 2048 }
  0x19   : > { %p1313_p8 = scmp.ne.s32.totalorder %s1890_s2, %s1312_s16  ;;  %p1319_p12 = scmp.lt.u32.totalorder %s1312_s16, %s1890_s2 }
  0x1b   : > { %p1315_p10 = pnand %p1314_p9, %p1313_p8 }
  0x1d   : > { %p1316_p11 = pneg %p1315_p10 }
  0x1f   : > { %p1321_p13 = pnand %p1319_p12, %p1316_p11 }
  0x21   : > { %1324 = shalt.err (!%p1321_p13)
}
  0x22   : > { %s1325_s21 = scalar_lea.vmem %s226_s10, 2048  ;;  %p1333_p6 = scmp.lt.s32.totalorder %s226_s10, %s226_s10 }
  0x23   : > { %p1326_p0 = scmp.ne.s32.totalorder %s226_s10, %s1325_s21  ;;  %p1334_p1 = scmp.lt.s32.totalorder %s1325_s21, %s1325_s21 }
  0x25   : > { %p1328_p2 = pnand %p1326_p0, %p1314_p9  ;;  %p1335_p4 = por %p1334_p1, %p1333_p6 }
  0x27   : > { %p1329_p3 = pneg %p1328_p2 }
  0x29   : > { %p1336_p5 = pnand %p1335_p4, %p1329_p3 }
  0x2b   : > { %1339 = shalt.err (!%p1336_p5)
}
  0x2c   : > { %s1881_s22 = smov 128   ;;  %s1883_s23 = smov 8  }
  0x2d   : > { %1260 = dma.hbm_to_vmem [thread:$0]  (!%p1564_p7), %s1890_s2, 2048, %s226_s10, [#allocation6], %s1881_s22, %s1881_s22, %s1883_s23  }
  0x2e   : > { %s1340_s12 = scalar_lea.hbm %s1873_s3, 2048 }
  0x2f   : > { %p1341_p1 = scmp.ne.s32.totalorder %s1873_s3, %s1340_s12  ;;  %p1347_p8 = scmp.lt.u32.totalorder %s1340_s12, %s1873_s3 }
  0x31   : > { %p1343_p4 = pnand %p1341_p1, %p1314_p9 }
  0x33   : > { %p1344_p5 = pneg %p1343_p4 }
  0x35   : > { %p1349_p10 = pnand %p1347_p8, %p1344_p5 }
  0x37   : > { %1352 = shalt.err (!%p1349_p10)
}
  0x38   : > { %s1353_s10 = scalar_lea.vmem %s1568_s13, 2048  ;;  %p1361_p0 = scmp.lt.s32.totalorder %s1568_s13, %s1568_s13 }
  0x39   : > { %p1354_p11 = scmp.ne.s32.totalorder %s1568_s13, %s1353_s10  ;;  %p1362_p2 = scmp.lt.s32.totalorder %s1353_s10, %s1353_s10 }
  0x3b   : > { %p1356_p12 = pnand %p1354_p11, %p1314_p9  ;;  %p1363_p3 = por %p1362_p2, %p1361_p0 }
  0x3d   : > { %p1357_p13 = pneg %p1356_p12 }
  0x3f   : > { %p1364_p6 = pnand %p1363_p3, %p1357_p13 }
  0x41   : > { %1367 = shalt.err (!%p1364_p6)
}
  0x42   : > { %1263 = dma.hbm_to_vmem [thread:$0]  (!%p1564_p7), %s1873_s3, 2048, %s1568_s13, [#allocation9], %s1881_s22, %s1881_s22, %s1883_s23  }
  0x43   : > { %s1624_s20 = sadd.s32 1, %s1474_s29   ;;  %s32_s11 = sadd.s32 1, %s1470_s28 }
  0x44   : > { %s29_s21 = ssub.s32 %s1474_s29, %s1624_s20  ;;  %p39_p9 = scmp.ne.s32.totalorder %s1470_s28, %s1466_s27 }
  0x45   : > { %p30_p1 = scmp.eq.s32.totalorder %s29_s21, 0  ;;  %p40_p4 = scmp.eq.s32.totalorder %s1474_s29, 0 }
  0x46   : > { %p1273_p5 = scmp.lt.s32.totalorder %s1474_s29, 2  ;;  %s261_s24 = sand.u32 1, %s1470_s28  }
  0x47   : > { %s1635_s25 = scalar_select %p30_p1, %s1470_s28, %s32_s11  }
  0x48   : > { %p41_p8 = por %p40_p4, %p39_p9  ;;  %s1637_s26 = sshll.u32 %s261_s24, 7 }
  0x49   : > { %s987_s9 = sshll.u32 %s1474_s29, 11  ;;  %s1891_s0 = sld [smem:[#allocation14_spill]] }
  0x4a   : > { %s265_s15 = scalar_lea.vmem [#allocation3], %s1637_s26  ;;  %p1646_p7 = pnand %p1273_p5, %p41_p8 }
  0x4b   : > { %s272_s16 = sshll.u32 %s265_s15, 4  ;;  %s1655_s19 = scalar_lea.hbm %s1871_s1, %s987_s9  ;;  %s1650_s16 = int_to_ptr.vmem [resolvable:$true] %s272_s16 }
  0x4c   : > { %s1657_s11 = scalar_lea.sflag [#allocation4], %s261_s24  ;;  %p1370_p11 = pneg %p1646_p7 }
  0x4f   : > { %s1643_s13 = scalar_lea.hbm %s1891_s0, %s987_s9  ;;  %s1373_s15 = scalar_lea.hbm %s1891_s0, 4096 }
  0x50   : > { %s1368_s21 = scalar_lea.hbm %s1643_s13, 2048  ;;  %p1374_p0 = scmp.lt.u32.totalorder %s1643_s13, %s1891_s0 }
  0x51   : > { %p1369_p10 = scmp.ne.s32.totalorder %s1643_s13, %s1368_s21  ;;  %p1375_p2 = scmp.lt.u32.totalorder %s1373_s15, %s1368_s21 }
  0x52   : > { %p1377_p6 = scmp.lt.u32.totalorder %s1368_s21, %s1643_s13 }
  0x53   : > { %p1371_p12 = pnand %p1370_p11, %p1369_p10  ;;  %p1376_p3 = por %p1375_p2, %p1374_p0 }
  0x55   : > { %p1372_p13 = pneg %p1371_p12  ;;  %p1378_p9 = por %p1377_p6, %p1376_p3 }
  0x57   : > { %p1379_p1 = pnand %p1378_p9, %p1372_p13 }
  0x59   : > { %1382 = shalt.err (!%p1379_p1)
}
  0x5a   : > { %s1383_s24 = scalar_lea.vmem %s1650_s16, 2048  ;;  %s1480_s9 = smov [#allocation3]  }
  0x5b   : > { %p1384_p4 = scmp.ne.s32.totalorder %s1650_s16, %s1383_s24  ;;  %s1388_s10 = sshll.u32 %s1480_s9, 4  ;;  %s1389_s10 = int_to_ptr.vmem [resolvable:$false] %s1388_s10 }
  0x5c   : > { %s1390_s22 = scalar_lea.vmem %s1389_s10, 4096  ;;  %p1391_p10 = scmp.lt.s32.totalorder %s1650_s16, %s1389_s10 }
  0x5d   : > { %p1386_p5 = pnand %p1384_p4, %p1370_p11  ;;  %p1392_p12 = scmp.lt.s32.totalorder %s1390_s22, %s1383_s24 }
  0x5f   : > { %p1387_p8 = pneg %p1386_p5  ;;  %p1393_p0 = por %p1392_p12, %p1391_p10 }
  0x61   : > { %p1394_p2 = pnand %p1393_p0, %p1387_p8 }
  0x63   : > { %1397 = shalt.err (!%p1394_p2)
}
  0x64   : > { %s1893_s23 = smov 8   ;;  %s1894_s18 = smov 128  }
  0x65   : > { %1267 = dma.hbm_to_vmem [thread:$0]  (!%p1646_p7), %s1643_s13, 2048, %s1650_s16, %s1657_s11, %s1894_s18, %s1894_s18, %s1893_s23  }
  0x66   : > { %s286_s21 = scalar_lea.vmem [#allocation5], %s1637_s26  ;;  %s282_s14 = sand.u32 1, %s1474_s29  }
  0x67   : > { %s293_s12 = sshll.u32 %s286_s21, 4  ;;  %s1692_s15 = scalar_lea.sflag [#allocation6], %s282_s14  ;;  %s1690_s12 = int_to_ptr.vmem [resolvable:$true] %s293_s12 }
  0x68   : > { %s1398_s24 = scalar_lea.hbm %s1655_s19, 2048  ;;  %s1403_s22 = scalar_lea.hbm %s1871_s1, 4096 }
  0x69   : > { %p1399_p13 = scmp.ne.s32.totalorder %s1655_s19, %s1398_s24  ;;  %p1404_p9 = scmp.lt.u32.totalorder %s1655_s19, %s1871_s1 }
  0x6a   : > { %p1405_p1 = scmp.lt.u32.totalorder %s1403_s22, %s1398_s24  ;;  %p1407_p5 = scmp.lt.u32.totalorder %s1398_s24, %s1655_s19 }
  0x6b   : > { %p1401_p3 = pnand %p1399_p13, %p1370_p11 }
  0x6c   : > { %p1406_p4 = por %p1405_p1, %p1404_p9 }
  0x6d   : > { %p1402_p6 = pneg %p1401_p3 }
  0x6e   : > { %p1408_p8 = por %p1407_p5, %p1406_p4 }
  0x70   : > { %p1409_p10 = pnand %p1408_p8, %p1402_p6 }
  0x72   : > { %1412 = shalt.err (!%p1409_p10)
}
  0x73   : > { %s1413_s29 = scalar_lea.vmem %s1690_s12, 2048  ;;  %s1481_s26 = smov [#allocation5]  }
  0x74   : > { %p1414_p12 = scmp.ne.s32.totalorder %s1690_s12, %s1413_s29  ;;  %s1418_s13 = sshll.u32 %s1481_s26, 4  ;;  %s1419_s13 = int_to_ptr.vmem [resolvable:$false] %s1418_s13 }
  0x75   : > { %s1420_s0 = scalar_lea.vmem %s1419_s13, 4096  ;;  %p1421_p13 = scmp.lt.s32.totalorder %s1690_s12, %s1419_s13 }
  0x76   : > { %p1416_p0 = pnand %p1414_p12, %p1370_p11  ;;  %p1422_p3 = scmp.lt.s32.totalorder %s1420_s0, %s1413_s29 }
  0x78   : > { %p1417_p2 = pneg %p1416_p0  ;;  %p1423_p9 = por %p1422_p3, %p1421_p13 }
  0x7a   : > { %p1424_p1 = pnand %p1423_p9, %p1417_p2 }
  0x7c   : > { %1427 = shalt.err (!%p1424_p1)
}
  0x7d   : > { %1270 = dma.hbm_to_vmem [thread:$0]  (!%p1646_p7), %s1655_s19, 2048, %s1690_s12, %s1692_s15, %s1894_s18, %s1894_s18, %s1893_s23  }
  0x7e   : > { %p1895_p11 = scmp.ne.s32.totalorder %s1888_s8, 0 }
  0x7f   : > { %s307_s2 = sand.u32 (!%p1895_p11), 1, %s1466_s27   ;;  %p1896_p6 = scmp.ne.s32.totalorder (!%p1895_p11), %s1887_s30, 0 }
  0x80   : > { %305 = sbr.rel (%p1895_p11) target bundleno = 579 (0x243), region = 48  ;;  %s977_s16 = sshll.u32 (!%p1895_p11), %s307_s2, 7 }
  0x81   : > { %s308_s11 = scalar_lea.sflag (!%p1895_p11), [#allocation4], %s307_s2  ;;  %s1724_s21 = scalar_lea.vmem (!%p1895_p11), [#allocation3], %s977_s16 }
  0x87   : > { %1445 = dma.done.wait (%p1896_p6), %s308_s11, 2048  }
  0x88   : > { %1447 = vsyncadd (%p1896_p6), %s308_s11, 4294965248  ;;  %s316_s17 = sand.u32 1, %s1544_s6   ;;  %s1731_s19 = scalar_lea.vmem [#allocation5], %s977_s16 }
  0x89   : > { %s317_s14 = scalar_lea.sflag [#allocation6], %s316_s17 }
  0x8a   : > { %1449 = dma.done.wait (%p1896_p6), %s317_s14, 2048  }
  0x8b   : > { %1451 = vsyncadd (%p1896_p6), %s317_s14, 4294965248  ;;  %p1897_p7 = scmp.eq.s32.totalorder %s1544_s6, 0 }
  0x8d   : > { %1453 = dma.done.wait (%p1897_p7), [#allocation6], 2048   ;;  %p1898_p4 = pmov %p1897_p7 }
  0x8f   : > { %1455 = vsyncadd (%p1898_p4), [#allocation6], 4294965248  ;;  %p1899_p5 = pmov %p1898_p4 }
  0x90   : > { %p1900_p8 = pmov %p1898_p4 }
  0x91   : > { %1457 = dma.done.wait (%p1899_p5), [#allocation9], 2048  }
  0x92   : > { %1459 = vsyncadd (%p1900_p8), [#allocation9], 4294965248  ;;  %v420_v0 = vld [vmem:[#allocation8] sm:$0xff]  ;;  %v421_v1 = vld [vmem:[#allocation8 + $0x8] sm:$0xff]  ;;  %s981_s12 = sshll.u32 %s1544_s6, 4  ;;  %s820_s15 = sld [smem:[#allocation2]] }
  0x93   : > { %v388_v2 = vld [vmem:[#allocation7] sm:$0xff]  ;;  %v1165_v3 = vpack.c.bf16 %v421_v1, %v420_v0  ;;  %v389_v4 = vld [vmem:[#allocation7 + $0x8] sm:$0xff]  ;;  %v422_v5 = vld [vmem:[#allocation8 + $0x10] sm:$0xff]  ;;  %p367_p10 = scmp.lt.s32.totalorder %s981_s12, 31  ;;  %vm838_vm0 = vcmask 7168  }
  0x94   : > { %v423_v6 = vld [vmem:[#allocation8 + $0x18] sm:$0xff]  ;;  %v1197_v7 = vpack.c.bf16 %v389_v4, %v388_v2  ;;  %v390_v9 = vld [vmem:[#allocation7 + $0x10] sm:$0xff]  ;;  %v424_v11 = vld [vmem:[#allocation8 + $0x20] sm:$0xff] }
  0x95   : > { %v1169_v8 = vpack.c.bf16 %v423_v6, %v422_v5  ;;  %v391_v10 = vld [vmem:[#allocation7 + $0x18] sm:$0xff]  ;;  %1166 = vmatprep.subr.bf16.mxu1 %v1165_v3  ;;  %v425_v13 = vld [vmem:[#allocation8 + $0x28] sm:$0xff]  ;;  %v392_v14 = vld [vmem:[#allocation7 + $0x20] sm:$0xff]  ;;  %s1906_s12 = smov (!%p367_p10, %s981_s12), 31 }
  0x96   : > { %v1201_v12 = vpack.c.bf16 %v391_v10, %v390_v9  ;;  %v393_v15 = vld [vmem:[#allocation7 + $0x28] sm:$0xff]  ;;  %1198 = vmatprep.subr.bf16.mxu0 %v1197_v7  ;;  %1168 = vmatpush3.bf16.msra.mxu1 %v1165_v3  ;;  %v1173_v16 = vpack.c.bf16 %v425_v13, %v424_v11  ;;  %v426_v18 = vld [vmem:[#allocation8 + $0x30] sm:$0xff]  ;;  %v427_v19 = vld [vmem:[#allocation8 + $0x38] sm:$0xff]  ;;  %s982_s24 = sshll.u32 %s1906_s12, 3 }
  0x97   : > { %1200 = vmatpush3.bf16.msra.mxu0 %v1197_v7  ;;  %1170 = vmatprep.subr.bf16.mxu1 %v1169_v8  ;;  %v1205_v17 = vpack.c.bf16 %v393_v15, %v392_v14  ;;  %v394_v20 = vld [vmem:[#allocation7 + $0x30] sm:$0xff]  ;;  %v395_v21 = vld [vmem:[#allocation7 + $0x38] sm:$0xff]  ;;  %v1177_v22 = vpack.c.bf16 %v427_v19, %v426_v18  ;;  %v428_v24 = vld [vmem:[#allocation8 + $0x40] sm:$0xff]  ;;  %s1823_s22 = scalar_lea.vmem %s1877_s7, %s982_s24 }
  0x98   : > { %1202 = vmatprep.subr.bf16.mxu0 %v1201_v12  ;;  %v1209_v23 = vpack.c.bf16 %v395_v21, %v394_v20  ;;  %v429_v25 = vld [vmem:[#allocation8 + $0x48] sm:$0xff]  ;;  %v404_v26 = vld [vmem:[%s1731_s19] sm:$0xff]  ;;  %v430_v32 = vld [vmem:[#allocation8 + $0x50] sm:$0xff] }
  0x99   : > { %v396_v27 = vld [vmem:[#allocation7 + $0x40] sm:$0xff]  ;;  %v397_v28 = vld [vmem:[#allocation7 + $0x48] sm:$0xff]  ;;  %1085 = vmatprep.mubr.f32.mxu1 %v404_v26  ;;  %v1181_v30 = vpack.c.bf16 %v429_v25, %v428_v24  ;;  %v431_v33 = vld [vmem:[#allocation8 + $0x58] sm:$0xff] }
  0x9a   : > { %1172 = vmatpush3.bf16.msra.mxu1 %v1169_v8  ;;  %v372_v29 = vld [vmem:[%s1724_s21] sm:$0xff]  ;;  %v1213_v31 = vpack.c.bf16 %v397_v28, %v396_v27  ;;  %v398_v34 = vld [vmem:[#allocation7 + $0x50] sm:$0xff]  ;;  %v399_v35 = vld [vmem:[#allocation7 + $0x58] sm:$0xff]  ;;  %v1185_v36 = vpack.c.bf16 %v431_v33, %v430_v32 }
  0x9b   : > { %1204 = vmatpush3.bf16.msra.mxu0 %v1201_v12  ;;  %1174 = vmatprep.subr.bf16.mxu1 %v1173_v16  ;;  %v1217_v37 = vpack.c.bf16 %v399_v35, %v398_v34  ;;  %v432_v38 = vld [vmem:[#allocation8 + $0x60] sm:$0xff]  ;;  %v433_v39 = vld [vmem:[#allocation8 + $0x68] sm:$0xff]  ;;  %v434_v44 = vld [vmem:[#allocation8 + $0x70] sm:$0xff] }
  0x9c   : > { %1206 = vmatprep.subr.bf16.mxu0 %v1205_v17  ;;  %1141 = vmatprep.mubr.f32.mxu0 %v372_v29  ;;  %v400_v40 = vld [vmem:[#allocation7 + $0x60] sm:$0xff]  ;;  %v401_v41 = vld [vmem:[#allocation7 + $0x68] sm:$0xff]  ;;  %v1189_v42 = vpack.c.bf16 %v433_v39, %v432_v38  ;;  %v435_v45 = vld [vmem:[#allocation8 + $0x78] sm:$0xff] }
  0x9d   : > { %v1221_v43 = vpack.c.bf16 %v401_v41, %v400_v40  ;;  %v402_v46 = vld [vmem:[#allocation7 + $0x70] sm:$0xff]  ;;  %v403_v47 = vld [vmem:[#allocation7 + $0x78] sm:$0xff]  ;;  %v1193_v48 = vpack.c.bf16 %v435_v45, %v434_v44  ;;  %v405_v50 = vld [vmem:[%s1731_s19 + $0x8] sm:$0xff] }
  0x9e   : > { %1176 = vmatpush3.bf16.msra.mxu1 %v1173_v16  ;;  %v1225_v49 = vpack.c.bf16 %v403_v47, %v402_v46  ;;  %v373_v51 = vld [vmem:[%s1724_s21 + $0x8] sm:$0xff]  ;;  %v406_v52 = vld [vmem:[%s1731_s19 + $0x10] sm:$0xff]  ;;  %v407_v54 = vld [vmem:[%s1731_s19 + $0x18] sm:$0xff] }
  0x9f   : > { %1208 = vmatpush3.bf16.msra.mxu0 %v1205_v17  ;;  %1178 = vmatprep.subr.bf16.mxu1 %v1177_v22  ;;  %v374_v53 = vld [vmem:[%s1724_s21 + $0x10] sm:$0xff]  ;;  %v375_v55 = vld [vmem:[%s1724_s21 + $0x18] sm:$0xff]  ;;  %v408_v56 = vld [vmem:[%s1731_s19 + $0x20] sm:$0xff] }
  0xa0   : > { %1210 = vmatprep.subr.bf16.mxu0 %v1209_v23  ;;  %v376_v57 = vld [vmem:[%s1724_s21 + $0x20] sm:$0xff]  ;;  %v409_v58 = vld [vmem:[%s1731_s19 + $0x28] sm:$0xff]  ;;  %v410_v60 = vld [vmem:[%s1731_s19 + $0x30] sm:$0xff] }
  0xa1   : > { %v377_v59 = vld [vmem:[%s1724_s21 + $0x28] sm:$0xff]  ;;  %v378_v61 = vld [vmem:[%s1724_s21 + $0x30] sm:$0xff]  ;;  %v411_v62 = vld [vmem:[%s1731_s19 + $0x38] sm:$0xff] }
  0xa2   : > { %1180 = vmatpush3.bf16.msra.mxu1 %v1177_v22  ;;  %v379_v63 = vld [vmem:[%s1724_s21 + $0x38] sm:$0xff]  ;;  %v412_v0 = vld [vmem:[%s1731_s19 + $0x40] sm:$0xff]  ;;  %v413_v2 = vld [vmem:[%s1731_s19 + $0x48] sm:$0xff] }
  0xa3   : > { %1212 = vmatpush3.bf16.msra.mxu0 %v1209_v23  ;;  %1182 = vmatprep.subr.bf16.mxu1 %v1181_v30  ;;  %v380_v1 = vld [vmem:[%s1724_s21 + $0x40] sm:$0xff]  ;;  %v381_v3 = vld [vmem:[%s1724_s21 + $0x48] sm:$0xff]  ;;  %v414_v4 = vld [vmem:[%s1731_s19 + $0x50] sm:$0xff] }
  0xa4   : > { %1214 = vmatprep.subr.bf16.mxu0 %v1213_v31  ;;  %v382_v5 = vld [vmem:[%s1724_s21 + $0x50] sm:$0xff]  ;;  %v415_v6 = vld [vmem:[%s1731_s19 + $0x58] sm:$0xff]  ;;  %v416_v8 = vld [vmem:[%s1731_s19 + $0x60] sm:$0xff] }
  0xa5   : > { %v383_v7 = vld [vmem:[%s1724_s21 + $0x58] sm:$0xff]  ;;  %v384_v9 = vld [vmem:[%s1724_s21 + $0x60] sm:$0xff]  ;;  %v417_v10 = vld [vmem:[%s1731_s19 + $0x68] sm:$0xff] }
  0xa6   : > { %1184 = vmatpush3.bf16.msra.mxu1 %v1181_v30  ;;  %v385_v11 = vld [vmem:[%s1724_s21 + $0x68] sm:$0xff]  ;;  %v418_v12 = vld [vmem:[%s1731_s19 + $0x70] sm:$0xff]  ;;  %v419_v14 = vld [vmem:[%s1731_s19 + $0x78] sm:$0xff] }
  0xa7   : > { %1216 = vmatpush3.bf16.msra.mxu0 %v1213_v31  ;;  %1186 = vmatprep.subr.bf16.mxu1 %v1185_v36  ;;  %v386_v13 = vld [vmem:[%s1724_s21 + $0x70] sm:$0xff]  ;;  %v387_v15 = vld [vmem:[%s1724_s21 + $0x78] sm:$0xff]  ;;  %v1780_v19 = vld [vmem:[%s1874_s4] ss:$0 sm:$0xff] }
  0xa8   : > { %1218 = vmatprep.subr.bf16.mxu0 %v1217_v37  ;;  %v1787_v28 = vld [vmem:[%s1875_s5] ss:$0 sm:$0xff] }
  0xaa   : > { %1188 = vmatpush3.bf16.msra.mxu1 %v1185_v36 }
  0xab   : > { %1220 = vmatpush3.bf16.msra.mxu0 %v1217_v37  ;;  %1190 = vmatprep.subr.bf16.mxu1 %v1189_v42 }
  0xac   : > { %1222 = vmatprep.subr.bf16.mxu0 %v1221_v43 }
  0xae   : > { %1192 = vmatpush3.bf16.msra.mxu1 %v1189_v42 }
  0xaf   : > { %1224 = vmatpush3.bf16.msra.mxu0 %v1221_v43  ;;  %1194 = vmatprep.subr.bf16.mxu1 %v1193_v48 }
  0xb0   : > { %1226 = vmatprep.subr.bf16.mxu0 %v1225_v49 }
  0xb2   : > { %1196 = vmatpush3.bf16.msra.mxu1 %v1193_v48 }
  0xb3   : > { %1228 = vmatpush3.bf16.msra.mxu0 %v1225_v49 }
  0xb5   : > { %1086 = vmatmul.mubr.f32.vlgmr.msra.gmra.mrb[0].mxu1 %v405_v50 }
  0xb6   : > { %1142 = vmatmul.mubr.f32.vlgmr.msra.gmra.mrb[0].mxu0 %v373_v51  ;;  %1088 = vmatprep.mubr.f32.mxu1 %v406_v52 }
  0xb7   : > { %1144 = vmatprep.mubr.f32.mxu0 %v374_v53 }
  0xb9   : > { %1089 = vmatmul.mubr.f32.gmra.mrb[2].mxu1 %v407_v54 }
  0xba   : > { %1145 = vmatmul.mubr.f32.gmra.mrb[2].mxu0 %v375_v55  ;;  %1091 = vmatprep.mubr.f32.mxu1 %v408_v56 }
  0xbb   : > { %1147 = vmatprep.mubr.f32.mxu0 %v376_v57 }
  0xbd   : > { %1092 = vmatmul.mubr.f32.gmra.mrb[4].mxu1 %v409_v58 }
  0xbe   : > { %1148 = vmatmul.mubr.f32.gmra.mrb[4].mxu0 %v377_v59  ;;  %1094 = vmatprep.mubr.f32.mxu1 %v410_v60 }
  0xbf   : > { %1150 = vmatprep.mubr.f32.mxu0 %v378_v61 }
  0xc1   : > { %1095 = vmatmul.mubr.f32.gmra.mrb[6].mxu1 %v411_v62 }
  0xc2   : > { %1151 = vmatmul.mubr.f32.gmra.mrb[6].mxu0 %v379_v63  ;;  %1097 = vmatprep.mubr.f32.mxu1 %v412_v0 }
  0xc3   : > { %1153 = vmatprep.mubr.f32.mxu0 %v380_v1 }
  0xc5   : > { %1098 = vmatmul.mubr.f32.gmra.mrb[8].mxu1 %v413_v2 }
  0xc6   : > { %1154 = vmatmul.mubr.f32.gmra.mrb[8].mxu0 %v381_v3  ;;  %1100 = vmatprep.mubr.f32.mxu1 %v414_v4 }
  0xc7   : > { %1156 = vmatprep.mubr.f32.mxu0 %v382_v5 }
  0xc9   : > { %1101 = vmatmul.mubr.f32.gmra.mrb[10].mxu1 %v415_v6 }
  0xca   : > { %1157 = vmatmul.mubr.f32.gmra.mrb[10].mxu0 %v383_v7  ;;  %1103 = vmatprep.mubr.f32.mxu1 %v416_v8 }
  0xcb   : > { %1159 = vmatprep.mubr.f32.mxu0 %v384_v9 }
  0xcd   : > { %1104 = vmatmul.mubr.f32.gmra.mrb[12].mxu1 %v417_v10 }
  0xce   : > { %1160 = vmatmul.mubr.f32.gmra.mrb[12].mxu0 %v385_v11  ;;  %1106 = vmatprep.mubr.f32.mxu1 %v418_v12 }
  0xcf   : > { %1162 = vmatprep.mubr.f32.mxu0 %v386_v13 }
  0xd1   : > { %1107 = vmatmul.mubr.f32.gmra.mrb[14].mxu1 %v419_v14 }
  0xd2   : > { %1163 = vmatmul.mubr.f32.gmra.mrb[14].mxu0 %v387_v15 }
 0x188   : > { %v1087_v16 = vpop.f32.mrb[0].mxu1 }
 0x189   : > { %v1143_v17 = vpop.f32.mrb[0].mxu0  ;;  %v502_v18 = vpop.f32.mrb[1].mxu1 }
 0x18a   : > { %v653_v20 = vadd.f32 %v1143_v17, %v1087_v16  ;;  %v647_v21 = vpop.f32.mrb[1].mxu0 }
 0x18b   : > { %v648_v22 = vadd.f32 %v647_v21, %v502_v18 }
 0x18c   : > { %v1090_v23 = vpop.f32.mrb[2].mxu1  ;;  %v734_v24 = vadd.f32 %v1780_v19, %v653_v20 }
 0x18d   : > { %v733_v25 = vadd.f32 %v1780_v19, %v648_v22  ;;  %v1146_v26 = vpop.f32.mrb[2].mxu0  ;;  %v512_v27 = vpop.f32.mrb[3].mxu1 }
 0x18e   : > { %v663_v29 = vadd.f32 %v1146_v26, %v1090_v23  ;;  %v657_v30 = vpop.f32.mrb[3].mxu0  ;;  %v750_v31 = vmax.f32 %v734_v24, 0.0 }
 0x18f   : > { %v658_v32 = vadd.f32 %v657_v30, %v512_v27  ;;  %v749_v33 = vmax.f32 %v733_v25, 0.0 }
 0x190   : > { %v773_v34 = vmul.f32 %v1787_v28, %v750_v31  ;;  %v1093_v35 = vpop.f32.mrb[4].mxu1  ;;  %v736_v36 = vadd.f32 %v1780_v19, %v663_v29 }
 0x191   : > { %v735_v37 = vadd.f32 %v1780_v19, %v658_v32  ;;  %v1149_v38 = vpop.f32.mrb[4].mxu0  ;;  %v522_v39 = vpop.f32.mrb[5].mxu1  ;;  %v772_v47 = vmul.f32 %v1787_v28, %v749_v33 }
 0x192   : > { %790 = vadd.xlane.f32.xlu0 %v773_v34  ;;  %v673_v40 = vadd.f32 %v1149_v38, %v1093_v35  ;;  %v667_v41 = vpop.f32.mrb[5].mxu0  ;;  %v752_v42 = vmax.f32 %v736_v36, 0.0 }
 0x193   : > { %v668_v43 = vadd.f32 %v667_v41, %v522_v39  ;;  %v751_v44 = vmax.f32 %v735_v37, 0.0 }
 0x194   : > { %v738_v45 = vadd.f32 %v1780_v19, %v673_v40  ;;  %v775_v46 = vmul.f32 %v1787_v28, %v752_v42  ;;  %v1096_v48 = vpop.f32.mrb[6].mxu1 }
 0x195   : > { %v737_v49 = vadd.f32 %v1780_v19, %v668_v43  ;;  %v1152_v50 = vpop.f32.mrb[6].mxu0  ;;  %v532_v51 = vpop.f32.mrb[7].mxu1  ;;  %v774_v58 = vmul.f32 %v1787_v28, %v751_v44 }
 0x196   : > { %v754_v52 = vmax.f32 %v738_v45, 0.0  ;;  %794 = vadd.xlane.f32.xlu1 %v775_v46  ;;  %788 = vadd.xlane.f32.xlu0 %v772_v47  ;;  %v683_v53 = vadd.f32 %v1152_v50, %v1096_v48  ;;  %v677_v54 = vpop.f32.mrb[7].mxu0 }
 0x197   : > { %v753_v55 = vmax.f32 %v737_v49, 0.0  ;;  %v678_v56 = vadd.f32 %v677_v54, %v532_v51 }
 0x198   : > { %v740_v57 = vadd.f32 %v1780_v19, %v683_v53  ;;  %v1099_v59 = vpop.f32.mrb[8].mxu1  ;;  %v777_v3 = vmul.f32 %v1787_v28, %v754_v52 }
 0x199   : > { %v739_v60 = vadd.f32 %v1780_v19, %v678_v56  ;;  %v1155_v61 = vpop.f32.mrb[8].mxu0  ;;  %v542_v62 = vpop.f32.mrb[9].mxu1  ;;  %v776_v63 = vmul.f32 %v1787_v28, %v753_v55 }
 0x19a   : > { %v756_v0 = vmax.f32 %v740_v57, 0.0  ;;  %792 = vadd.xlane.f32.xlu1 %v774_v58  ;;  %v693_v1 = vadd.f32 %v1155_v61, %v1099_v59  ;;  %v687_v2 = vpop.f32.mrb[9].mxu0 }
 0x19b   : > { %v755_v4 = vmax.f32 %v739_v60, 0.0  ;;  %v688_v5 = vadd.f32 %v687_v2, %v542_v62  ;;  %796 = vadd.xlane.f32.xlu0 %v776_v63 }
 0x19c   : > { %v742_v6 = vadd.f32 %v1780_v19, %v693_v1  ;;  %v1102_v7 = vpop.f32.mrb[10].mxu1  ;;  %v779_v15 = vmul.f32 %v1787_v28, %v756_v0 }
 0x19d   : > { %v741_v8 = vadd.f32 %v1780_v19, %v688_v5  ;;  %v1158_v9 = vpop.f32.mrb[10].mxu0  ;;  %v552_v10 = vpop.f32.mrb[11].mxu1  ;;  %v778_v11 = vmul.f32 %v1787_v28, %v755_v4 }
 0x19e   : > { %v758_v12 = vmax.f32 %v742_v6, 0.0  ;;  %798 = vadd.xlane.f32.xlu1 %v777_v3  ;;  %v703_v13 = vadd.f32 %v1158_v9, %v1102_v7  ;;  %v697_v14 = vpop.f32.mrb[11].mxu0 }
 0x19f   : > { %v757_v16 = vmax.f32 %v741_v8, 0.0  ;;  %v698_v17 = vadd.f32 %v697_v14, %v552_v10  ;;  %800 = vadd.xlane.f32.xlu0 %v778_v11 }
 0x1a0   : > { %v744_v18 = vadd.f32 %v1780_v19, %v703_v13  ;;  %v1105_v20 = vpop.f32.mrb[12].mxu1  ;;  %v781_v29 = vmul.f32 %v1787_v28, %v758_v12 }
 0x1a1   : > { %v743_v21 = vadd.f32 %v1780_v19, %v698_v17  ;;  %v1161_v22 = vpop.f32.mrb[12].mxu0  ;;  %v562_v23 = vpop.f32.mrb[13].mxu1  ;;  %v780_v24 = vmul.f32 %v1787_v28, %v757_v16 }
 0x1a2   : > { %v760_v25 = vmax.f32 %v744_v18, 0.0  ;;  %802 = vadd.xlane.f32.xlu1 %v779_v15  ;;  %v713_v26 = vadd.f32 %v1161_v22, %v1105_v20  ;;  %v707_v27 = vpop.f32.mrb[13].mxu0 }
 0x1a3   : > { %v759_v30 = vmax.f32 %v743_v21, 0.0  ;;  %v708_v31 = vadd.f32 %v707_v27, %v562_v23  ;;  %804 = vadd.xlane.f32.xlu0 %v780_v24 }
 0x1a4   : > { %v746_v32 = vadd.f32 %v1780_v19, %v713_v26  ;;  %v1108_v33 = vpop.f32.mrb[14].mxu1  ;;  %v783_v41 = vmul.f32 %v1787_v28, %v760_v25 }
 0x1a5   : > { %v745_v34 = vadd.f32 %v1780_v19, %v708_v31  ;;  %v1164_v35 = vpop.f32.mrb[14].mxu0  ;;  %v572_v36 = vpop.f32.mrb[15].mxu1  ;;  %v782_v37 = vmul.f32 %v1787_v28, %v759_v30 }
 0x1a6   : > { %v762_v38 = vmax.f32 %v746_v32, 0.0  ;;  %806 = vadd.xlane.f32.xlu1 %v781_v29  ;;  %v723_v39 = vadd.f32 %v1164_v35, %v1108_v33  ;;  %v717_v40 = vpop.f32.mrb[15].mxu0 }
 0x1a7   : > { %v761_v42 = vmax.f32 %v745_v34, 0.0  ;;  %v718_v43 = vadd.f32 %v717_v40, %v572_v36  ;;  %808 = vadd.xlane.f32.xlu0 %v782_v37 }
 0x1a8   : > { %v748_v44 = vadd.f32 %v1780_v19, %v723_v39  ;;  %v785_v48 = vmul.f32 %v1787_v28, %v762_v38 }
 0x1a9   : > { %v747_v45 = vadd.f32 %v1780_v19, %v718_v43  ;;  %v784_v46 = vmul.f32 %v1787_v28, %v761_v42  ;;  %v821_v19 = vstv %s820_s15 }
 0x1aa   : > { %v764_v47 = vmax.f32 %v748_v44, 0.0  ;;  %810 = vadd.xlane.f32.xlu1 %v783_v41 }
 0x1ab   : > { %v763_v49 = vmax.f32 %v747_v45, 0.0  ;;  %812 = vadd.xlane.f32.xlu0 %v784_v46 }
 0x1ac   : > { %v787_v51 = vmul.f32 %v1787_v28, %v764_v47 }
 0x1ad   : > { %v786_v50 = vmul.f32 %v1787_v28, %v763_v49 }
 0x1ae   : > { %814 = vadd.xlane.f32.xlu1 %v785_v48 }
 0x1af   : > { %816 = vadd.xlane.f32.xlu0 %v786_v50 }
 0x1b2   : > { %818 = vadd.xlane.f32.xlu1 %v787_v51 }
 0x21f   : > { %v791_v28 = vpop.xlane.xlu0 %790 }
 0x220   : > { %v823_v52 = vadd.f32 %v821_v19, %v791_v28 }
 0x222   : > { %840 = vst.msk [vmem:[%s1823_s22 + $0x8] sm:$0xff] %vm838_vm0, %v823_v52 }
 0x223   : > { %v795_v53 = vpop.xlane.xlu1 %794  ;;  %v789_v54 = vpop.xlane.xlu0 %788 }
 0x224   : > { %v825_v55 = vadd.f32 %v821_v19, %v795_v53  ;;  %v822_v56 = vadd.f32 %v821_v19, %v789_v54 }
 0x226   : > { %842 = vst.msk [vmem:[%s1823_s22 + $0x18] sm:$0xff] %vm838_vm0, %v825_v55  ;;  %839 = vst.msk [vmem:[%s1823_s22] sm:$0xff] %vm838_vm0, %v822_v56 }
 0x227   : > { %v793_v57 = vpop.xlane.xlu1 %792 }
 0x228   : > { %v824_v58 = vadd.f32 %v821_v19, %v793_v57  ;;  %v797_v59 = vpop.xlane.xlu0 %796 }
 0x229   : > { %v826_v60 = vadd.f32 %v821_v19, %v797_v59 }
 0x22a   : > { %841 = vst.msk [vmem:[%s1823_s22 + $0x10] sm:$0xff] %vm838_vm0, %v824_v58 }
 0x22b   : > { %843 = vst.msk [vmem:[%s1823_s22 + $0x20] sm:$0xff] %vm838_vm0, %v826_v60  ;;  %v799_v61 = vpop.xlane.xlu1 %798 }
 0x22c   : > { %v827_v62 = vadd.f32 %v821_v19, %v799_v61  ;;  %v801_v63 = vpop.xlane.xlu0 %800 }
 0x22d   : > { %v828_v0 = vadd.f32 %v821_v19, %v801_v63 }
 0x22e   : > { %844 = vst.msk [vmem:[%s1823_s22 + $0x28] sm:$0xff] %vm838_vm0, %v827_v62 }
 0x22f   : > { %845 = vst.msk [vmem:[%s1823_s22 + $0x30] sm:$0xff] %vm838_vm0, %v828_v0  ;;  %v803_v1 = vpop.xlane.xlu1 %802 }
 0x230   : > { %v829_v2 = vadd.f32 %v821_v19, %v803_v1  ;;  %v805_v3 = vpop.xlane.xlu0 %804 }
 0x231   : > { %v830_v4 = vadd.f32 %v821_v19, %v805_v3 }
 0x232   : > { %846 = vst.msk [vmem:[%s1823_s22 + $0x38] sm:$0xff] %vm838_vm0, %v829_v2 }
 0x233   : > { %847 = vst.msk [vmem:[%s1823_s22 + $0x40] sm:$0xff] %vm838_vm0, %v830_v4  ;;  %v807_v5 = vpop.xlane.xlu1 %806 }
 0x234   : > { %v831_v6 = vadd.f32 %v821_v19, %v807_v5  ;;  %v809_v7 = vpop.xlane.xlu0 %808 }
 0x235   : > { %v832_v8 = vadd.f32 %v821_v19, %v809_v7 }
 0x236   : > { %848 = vst.msk [vmem:[%s1823_s22 + $0x48] sm:$0xff] %vm838_vm0, %v831_v6 }
 0x237   : > { %849 = vst.msk [vmem:[%s1823_s22 + $0x50] sm:$0xff] %vm838_vm0, %v832_v8  ;;  %v811_v9 = vpop.xlane.xlu1 %810 }
 0x238   : > { %v833_v10 = vadd.f32 %v821_v19, %v811_v9  ;;  %v813_v11 = vpop.xlane.xlu0 %812 }
 0x239   : > { %v834_v12 = vadd.f32 %v821_v19, %v813_v11 }
 0x23a   : > { %850 = vst.msk [vmem:[%s1823_s22 + $0x58] sm:$0xff] %vm838_vm0, %v833_v10 }
 0x23b   : > { %851 = vst.msk [vmem:[%s1823_s22 + $0x60] sm:$0xff] %vm838_vm0, %v834_v12  ;;  %v815_v13 = vpop.xlane.xlu1 %814 }
 0x23c   : > { %v835_v14 = vadd.f32 %v821_v19, %v815_v13  ;;  %v817_v15 = vpop.xlane.xlu0 %816 }
 0x23d   : > { %v836_v16 = vadd.f32 %v821_v19, %v817_v15 }
 0x23e   : > { %852 = vst.msk [vmem:[%s1823_s22 + $0x68] sm:$0xff] %vm838_vm0, %v835_v14 }
 0x23f   : > { %853 = vst.msk [vmem:[%s1823_s22 + $0x70] sm:$0xff] %vm838_vm0, %v836_v16  ;;  %v819_v17 = vpop.xlane.xlu1 %818 }
 0x240   : > { %v837_v18 = vadd.f32 %v821_v19, %v819_v17 }
 0x242   : > { %854 = vst.msk [vmem:[%s1823_s22 + $0x78] sm:$0xff] %vm838_vm0, %v837_v18 }
 0x243 PF: > { %p22_p12 = scmp.ge.s32.totalorder %s1624_s20, 4   ;;  %s1901_s26 = smov %s1466_s27 }
 0x244   : > { %s1902_s27 = smov %s1470_s28  ;;  %s1903_s28 = smov %s1635_s25 }
 0x245   : > { %s1904_s29 = smov %s1624_s20  ;;  %24 = sbr.rel (!%p22_p12) target bundleno = 10 (0xa), region = 109 }
 0x24c   :  { %877 = vsyncpa [#allocation4], 1 }
 0x24d   :  { %879 = vsyncpa [#allocation4 + $0x1], 1 }
 0x24e   :  { %880 = vsyncpa [#allocation6], 1 }
 0x24f   :  { %882 = vsyncpa [#allocation6 + $0x1], 1 }
 0x250   :  { %883 = vsyncpa [#allocation9], 1 }

</bundles_post_ra>
